<compile_context>
chip_gen: v6e
topology: v6e:2x2x1
jax: 0.10.0
libtpu: 0.0.40
codegen_flags: <defaults>
</compile_context>

<pallas_src>
import numpy as np
import jax
import jax.numpy as jnp
from jax.experimental import pallas as pl
from jax.experimental.pallas import tpu as pltpu


# ----------------------------- parameter setup ------------------------------

def _fspecial_gauss_1d(size, sigma):
    # Matches the torch construction (float32).
    coords = np.arange(size, dtype=np.float32) - (size // 2)
    g = np.exp(-(coords ** 2) / (2.0 * np.float32(sigma) ** 2)).astype(np.float32)
    g = g / g.sum()
    return g  # (size,)


def _band_matrix(taps, in_len):
    """Banded Toeplitz matrix B (in_len, out_len) such that
    (img @ B)[:, j] = sum_k taps[k] * img[:, j + k]  (a 'valid' 1-D conv)."""
    ws = len(taps)
    out_len = in_len - ws + 1
    m = np.zeros((in_len, out_len), dtype=np.float32)
    for j in range(out_len):
        m[j:j + ws, j] = taps
    return m


# ------------------------------ pallas kernel -------------------------------

def _make_ssim_kernel(C, H, W, win_size, C1, C2):
    Ho = H - win_size + 1
    Wo = W - win_size + 1
    inv_count = np.float32(1.0 / float(C * Ho * Wo))

    def kernel(x_ref, y_ref, bw_ref, bh_ref, out_ref):
        bw = bw_ref[...]   # (W, Wo)  lane-pass band matrix
        bh = bh_ref[...]   # (Ho, H)  sublane-pass band matrix

        total = jnp.float32(0.0)
        for c in range(C):              # C is small & static -> unrolled
            xc = x_ref[0, c]            # (H, W)
            yc = y_ref[0, c]

            # Fused Gaussian filter bank on the MXU (horizontal then vertical).
            hx = jnp.dot(xc, bw, preferred_element_type=jnp.float32)
            hy = jnp.dot(yc, bw, preferred_element_type=jnp.float32)
            hxx = jnp.dot(xc * xc, bw, preferred_element_type=jnp.float32)
            hyy = jnp.dot(yc * yc, bw, preferred_element_type=jnp.float32)
            hxy = jnp.dot(xc * yc, bw, preferred_element_type=jnp.float32)

            mu1 = jnp.dot(bh, hx, preferred_element_type=jnp.float32)
            mu2 = jnp.dot(bh, hy, preferred_element_type=jnp.float32)
            Exx = jnp.dot(bh, hxx, preferred_element_type=jnp.float32)
            Eyy = jnp.dot(bh, hyy, preferred_element_type=jnp.float32)
            Exy = jnp.dot(bh, hxy, preferred_element_type=jnp.float32)

            # SSIM map math in f32 (variance terms stay f32 to avoid
            # catastrophic cancellation).
            mu1_sq = mu1 * mu1
            mu2_sq = mu2 * mu2
            mu1_mu2 = mu1 * mu2
            sigma1_sq = Exx - mu1_sq
            sigma2_sq = Eyy - mu2_sq
            sigma12 = Exy - mu1_mu2

            num = (2.0 * mu1_mu2 + C1) * (2.0 * sigma12 + C2)
            den = (mu1_sq + mu2_sq + C1) * (sigma1_sq + sigma2_sq + C2)
            ssim_map = num * pl.reciprocal(den)   # single reciprocal (EUP)

            total = total + jnp.sum(ssim_map)

        val = total * inv_count   # mean over (C, Ho, Wo) for this image
        out_ref[...] = jnp.broadcast_to(val, (1, 1, 128)).astype(jnp.float32)

    return kernel


# ------------------------------- wrapper -------------------------------------

def ssim_pallas(X, Y, *, win_size=11, win_sigma=1.5, data_range=255,
                size_average=True):
    """Reproduces SSIM(win_size=11, win_sigma=1.5, data_range=255,
    size_average=True, channel=C).forward(X, Y)."""
    assert X.ndim == 4 and X.shape == Y.shape
    assert win_size % 2 == 1
    N, C, H, W = X.shape
    assert H >= win_size and W >= win_size

    taps = _fspecial_gauss_1d(win_size, win_sigma)
    band_w = _band_matrix(taps, W)        # (W, Wo)
    band_h = _band_matrix(taps, H).T      # (Ho, H)
    Ho, Wo = H - win_size + 1, W - win_size + 1

    C1 = float((0.01 * data_range) ** 2)
    C2 = float((0.03 * data_range) ** 2)

    kernel = _make_ssim_kernel(C, H, W, win_size, C1, C2)

    out = pl.pallas_call(
        kernel,
        out_shape=jax.ShapeDtypeStruct((N, 1, 128), jnp.float32),
        grid=(N,),
        in_specs=[
            pl.BlockSpec((1, C, H, W), lambda n: (n, 0, 0, 0)),
            pl.BlockSpec((1, C, H, W), lambda n: (n, 0, 0, 0)),
            pl.BlockSpec((W, Wo), lambda n: (0, 0)),
            pl.BlockSpec((Ho, H), lambda n: (0, 0)),
        ],
        out_specs=pl.BlockSpec((1, 1, 128), lambda n: (n, 0, 0)),
        compiler_params=pltpu.CompilerParams(
            dimension_semantics=("parallel",),      # batch axis is independent
            vmem_limit_bytes=32 * 1024 * 1024,      # valid on v7x's 64 MiB VMEM
        ),
    )(X.astype(jnp.float32), Y.astype(jnp.float32),
      jnp.asarray(band_w), jnp.asarray(band_h))

    per_image = out[:, 0, 0]   # (N,) per-image SSIM
    return jnp.mean(per_image) if size_average else per_image


# --------------------------------- main --------------------------------------

if __name__ == "__main__":
    # Small shapes consistent with the module: N=2, C=3 (default channel),
    # spatial 32x32 (must be >= win_size=11; 32 keeps sublane tiling aligned).
    N, C, H, W = 2, 3, 32, 32
    key = jax.random.PRNGKey(0)
    kx, kn = jax.random.split(key)
    X = jax.random.uniform(kx, (N, C, H, W), jnp.float32, 0.0, 255.0)
    noise = jax.random.normal(kn, (N, C, H, W), jnp.float32) * 5.0
    Y = jnp.clip(X + noise, 0.0, 255.0)  # correlated pair, like image/prediction

    out = jax.jit(ssim_pallas)(X, Y)
    jax.block_until_ready(out)
    print("KERNEL_OK")
</pallas_src>

<mosaic_0001>
module attributes {stable_mosaic.version = 11 : i64} {
  func.func @kernel(%arg0: i32, %arg1: memref<1x3x32x32xf32, #tpu.memory_space<vmem>>, %arg2: memref<1x3x32x32xf32, #tpu.memory_space<vmem>>, %arg3: memref<32x22xf32, #tpu.memory_space<vmem>>, %arg4: memref<22x32xf32, #tpu.memory_space<vmem>>, %arg5: memref<1x1x128xf32, #tpu.memory_space<vmem>>) attributes {dimension_semantics = [#tpu.dimension_semantics<parallel>], iteration_bounds = array<i64: 2>, scalar_prefetch = 0 : i64, scratch_operands = 0 : i64, tpu.core_type = #tpu.core_type<tc>, window_params = [{transform_indices = @transform_0, window_bounds = array<i64: 1, 3, 32, 32>}, {transform_indices = @transform_1, window_bounds = array<i64: 1, 3, 32, 32>}, {pipeline_mode = #tpu.pipeline_mode<synchronous>, transform_indices = @transform_2, window_bounds = array<i64: 32, 22>}, {pipeline_mode = #tpu.pipeline_mode<synchronous>, transform_indices = @transform_3, window_bounds = array<i64: 22, 32>}, {transform_indices = @transform_4, window_bounds = array<i64: 1, 1, 128>}]} {
    %c0 = arith.constant 0 : index
    %c0_0 = arith.constant 0 : index
    %0 = vector.load %arg3[%c0, %c0_0] : memref<32x22xf32, #tpu.memory_space<vmem>>, vector<32x22xf32>
    %c0_1 = arith.constant 0 : index
    %c0_2 = arith.constant 0 : index
    %1 = vector.load %arg4[%c0_1, %c0_2] : memref<22x32xf32, #tpu.memory_space<vmem>>, vector<22x32xf32>
    %c0_3 = arith.constant 0 : index
    %c0_4 = arith.constant 0 : index
    %c0_5 = arith.constant 0 : index
    %c0_6 = arith.constant 0 : index
    %2 = vector.load %arg1[%c0_3, %c0_4, %c0_5, %c0_6] : memref<1x3x32x32xf32, #tpu.memory_space<vmem>>, vector<1x1x32x32xf32>
    %3 = vector.shape_cast %2 : vector<1x1x32x32xf32> to vector<32x32xf32>
    %c0_7 = arith.constant 0 : index
    %c0_8 = arith.constant 0 : index
    %c0_9 = arith.constant 0 : index
    %c0_10 = arith.constant 0 : index
    %4 = vector.load %arg2[%c0_7, %c0_8, %c0_9, %c0_10] : memref<1x3x32x32xf32, #tpu.memory_space<vmem>>, vector<1x1x32x32xf32>
    %5 = vector.shape_cast %4 : vector<1x1x32x32xf32> to vector<32x32xf32>
    %cst = arith.constant dense<0.000000e+00> : vector<32x22xf32>
    %6 = tpu.matmul %3, %0, %cst {dimension_numbers = #tpu.dot_dimension_numbers<[1], [0], [0], [1], [0, 0, 1, 1], [], []>} : vector<32x32xf32>, vector<32x22xf32>, vector<32x22xf32> -> vector<32x22xf32>
    %cst_11 = arith.constant dense<0.000000e+00> : vector<32x22xf32>
    %7 = tpu.matmul %5, %0, %cst_11 {dimension_numbers = #tpu.dot_dimension_numbers<[1], [0], [0], [1], [0, 0, 1, 1], [], []>} : vector<32x32xf32>, vector<32x22xf32>, vector<32x22xf32> -> vector<32x22xf32>
    %8 = arith.mulf %3, %3 : vector<32x32xf32>
    %cst_12 = arith.constant dense<0.000000e+00> : vector<32x22xf32>
    %9 = tpu.matmul %8, %0, %cst_12 {dimension_numbers = #tpu.dot_dimension_numbers<[1], [0], [0], [1], [0, 0, 1, 1], [], []>} : vector<32x32xf32>, vector<32x22xf32>, vector<32x22xf32> -> vector<32x22xf32>
    %10 = arith.mulf %5, %5 : vector<32x32xf32>
    %cst_13 = arith.constant dense<0.000000e+00> : vector<32x22xf32>
    %11 = tpu.matmul %10, %0, %cst_13 {dimension_numbers = #tpu.dot_dimension_numbers<[1], [0], [0], [1], [0, 0, 1, 1], [], []>} : vector<32x32xf32>, vector<32x22xf32>, vector<32x22xf32> -> vector<32x22xf32>
    %12 = arith.mulf %3, %5 : vector<32x32xf32>
    %cst_14 = arith.constant dense<0.000000e+00> : vector<32x22xf32>
    %13 = tpu.matmul %12, %0, %cst_14 {dimension_numbers = #tpu.dot_dimension_numbers<[1], [0], [0], [1], [0, 0, 1, 1], [], []>} : vector<32x32xf32>, vector<32x22xf32>, vector<32x22xf32> -> vector<32x22xf32>
    %cst_15 = arith.constant dense<0.000000e+00> : vector<22x22xf32>
    %14 = tpu.matmul %1, %6, %cst_15 {dimension_numbers = #tpu.dot_dimension_numbers<[1], [0], [0], [1], [0, 0, 1, 1], [], []>} : vector<22x32xf32>, vector<32x22xf32>, vector<22x22xf32> -> vector<22x22xf32>
    %cst_16 = arith.constant dense<0.000000e+00> : vector<22x22xf32>
    %15 = tpu.matmul %1, %7, %cst_16 {dimension_numbers = #tpu.dot_dimension_numbers<[1], [0], [0], [1], [0, 0, 1, 1], [], []>} : vector<22x32xf32>, vector<32x22xf32>, vector<22x22xf32> -> vector<22x22xf32>
    %cst_17 = arith.constant dense<0.000000e+00> : vector<22x22xf32>
    %16 = tpu.matmul %1, %9, %cst_17 {dimension_numbers = #tpu.dot_dimension_numbers<[1], [0], [0], [1], [0, 0, 1, 1], [], []>} : vector<22x32xf32>, vector<32x22xf32>, vector<22x22xf32> -> vector<22x22xf32>
    %cst_18 = arith.constant dense<0.000000e+00> : vector<22x22xf32>
    %17 = tpu.matmul %1, %11, %cst_18 {dimension_numbers = #tpu.dot_dimension_numbers<[1], [0], [0], [1], [0, 0, 1, 1], [], []>} : vector<22x32xf32>, vector<32x22xf32>, vector<22x22xf32> -> vector<22x22xf32>
    %cst_19 = arith.constant dense<0.000000e+00> : vector<22x22xf32>
    %18 = tpu.matmul %1, %13, %cst_19 {dimension_numbers = #tpu.dot_dimension_numbers<[1], [0], [0], [1], [0, 0, 1, 1], [], []>} : vector<22x32xf32>, vector<32x22xf32>, vector<22x22xf32> -> vector<22x22xf32>
    %19 = arith.mulf %14, %14 : vector<22x22xf32>
    %20 = arith.mulf %15, %15 : vector<22x22xf32>
    %21 = arith.mulf %14, %15 : vector<22x22xf32>
    %22 = arith.subf %16, %19 : vector<22x22xf32>
    %23 = arith.subf %17, %20 : vector<22x22xf32>
    %24 = arith.subf %18, %21 : vector<22x22xf32>
    %cst_20 = arith.constant 2.000000e+00 : f32
    %25 = vector.broadcast %cst_20 : f32 to vector<22x22xf32>
    %26 = arith.mulf %25, %21 : vector<22x22xf32>
    %cst_21 = arith.constant 6.502500e+00 : f32
    %27 = vector.broadcast %cst_21 : f32 to vector<22x22xf32>
    %28 = arith.addf %26, %27 : vector<22x22xf32>
    %cst_22 = arith.constant 2.000000e+00 : f32
    %29 = vector.broadcast %cst_22 : f32 to vector<22x22xf32>
    %30 = arith.mulf %29, %24 : vector<22x22xf32>
    %cst_23 = arith.constant 5.852250e+01 : f32
    %31 = vector.broadcast %cst_23 : f32 to vector<22x22xf32>
    %32 = arith.addf %30, %31 : vector<22x22xf32>
    %33 = arith.mulf %28, %32 : vector<22x22xf32>
    %34 = arith.addf %19, %20 : vector<22x22xf32>
    %cst_24 = arith.constant 6.502500e+00 : f32
    %35 = vector.broadcast %cst_24 : f32 to vector<22x22xf32>
    %36 = arith.addf %34, %35 : vector<22x22xf32>
    %37 = arith.addf %22, %23 : vector<22x22xf32>
    %cst_25 = arith.constant 5.852250e+01 : f32
    %38 = vector.broadcast %cst_25 : f32 to vector<22x22xf32>
    %39 = arith.addf %37, %38 : vector<22x22xf32>
    %40 = arith.mulf %36, %39 : vector<22x22xf32>
    %41 = tpu.reciprocal %40 : vector<22x22xf32> -> vector<22x22xf32>
    %42 = arith.mulf %33, %41 : vector<22x22xf32>
    %43 = vector.shape_cast %42 : vector<22x22xf32> to vector<1x22x22xf32>
    %cst_26 = arith.constant dense<0.000000e+00> : vector<1xf32>
    %44 = vector.multi_reduction <add>, %43, %cst_26 [1, 2] : vector<1x22x22xf32> to vector<1xf32>
    %45 = vector.shape_cast %44 : vector<1xf32> to vector<1x1x1xf32>
    %46 = vector.extract %45[0, 0, 0] : f32 from vector<1x1x1xf32>
    %cst_27 = arith.constant 0.000000e+00 : f32
    %47 = arith.addf %cst_27, %46 : f32
    %c0_28 = arith.constant 0 : index
    %c1 = arith.constant 1 : index
    %c0_29 = arith.constant 0 : index
    %c0_30 = arith.constant 0 : index
    %48 = vector.load %arg1[%c0_28, %c1, %c0_29, %c0_30] : memref<1x3x32x32xf32, #tpu.memory_space<vmem>>, vector<1x1x32x32xf32>
    %49 = vector.shape_cast %48 : vector<1x1x32x32xf32> to vector<32x32xf32>
    %c0_31 = arith.constant 0 : index
    %c1_32 = arith.constant 1 : index
    %c0_33 = arith.constant 0 : index
    %c0_34 = arith.constant 0 : index
    %50 = vector.load %arg2[%c0_31, %c1_32, %c0_33, %c0_34] : memref<1x3x32x32xf32, #tpu.memory_space<vmem>>, vector<1x1x32x32xf32>
    %51 = vector.shape_cast %50 : vector<1x1x32x32xf32> to vector<32x32xf32>
    %cst_35 = arith.constant dense<0.000000e+00> : vector<32x22xf32>
    %52 = tpu.matmul %49, %0, %cst_35 {dimension_numbers = #tpu.dot_dimension_numbers<[1], [0], [0], [1], [0, 0, 1, 1], [], []>} : vector<32x32xf32>, vector<32x22xf32>, vector<32x22xf32> -> vector<32x22xf32>
    %cst_36 = arith.constant dense<0.000000e+00> : vector<32x22xf32>
    %53 = tpu.matmul %51, %0, %cst_36 {dimension_numbers = #tpu.dot_dimension_numbers<[1], [0], [0], [1], [0, 0, 1, 1], [], []>} : vector<32x32xf32>, vector<32x22xf32>, vector<32x22xf32> -> vector<32x22xf32>
    %54 = arith.mulf %49, %49 : vector<32x32xf32>
    %cst_37 = arith.constant dense<0.000000e+00> : vector<32x22xf32>
    %55 = tpu.matmul %54, %0, %cst_37 {dimension_numbers = #tpu.dot_dimension_numbers<[1], [0], [0], [1], [0, 0, 1, 1], [], []>} : vector<32x32xf32>, vector<32x22xf32>, vector<32x22xf32> -> vector<32x22xf32>
    %56 = arith.mulf %51, %51 : vector<32x32xf32>
    %cst_38 = arith.constant dense<0.000000e+00> : vector<32x22xf32>
    %57 = tpu.matmul %56, %0, %cst_38 {dimension_numbers = #tpu.dot_dimension_numbers<[1], [0], [0], [1], [0, 0, 1, 1], [], []>} : vector<32x32xf32>, vector<32x22xf32>, vector<32x22xf32> -> vector<32x22xf32>
    %58 = arith.mulf %49, %51 : vector<32x32xf32>
    %cst_39 = arith.constant dense<0.000000e+00> : vector<32x22xf32>
    %59 = tpu.matmul %58, %0, %cst_39 {dimension_numbers = #tpu.dot_dimension_numbers<[1], [0], [0], [1], [0, 0, 1, 1], [], []>} : vector<32x32xf32>, vector<32x22xf32>, vector<32x22xf32> -> vector<32x22xf32>
    %cst_40 = arith.constant dense<0.000000e+00> : vector<22x22xf32>
    %60 = tpu.matmul %1, %52, %cst_40 {dimension_numbers = #tpu.dot_dimension_numbers<[1], [0], [0], [1], [0, 0, 1, 1], [], []>} : vector<22x32xf32>, vector<32x22xf32>, vector<22x22xf32> -> vector<22x22xf32>
    %cst_41 = arith.constant dense<0.000000e+00> : vector<22x22xf32>
    %61 = tpu.matmul %1, %53, %cst_41 {dimension_numbers = #tpu.dot_dimension_numbers<[1], [0], [0], [1], [0, 0, 1, 1], [], []>} : vector<22x32xf32>, vector<32x22xf32>, vector<22x22xf32> -> vector<22x22xf32>
    %cst_42 = arith.constant dense<0.000000e+00> : vector<22x22xf32>
    %62 = tpu.matmul %1, %55, %cst_42 {dimension_numbers = #tpu.dot_dimension_numbers<[1], [0], [0], [1], [0, 0, 1, 1], [], []>} : vector<22x32xf32>, vector<32x22xf32>, vector<22x22xf32> -> vector<22x22xf32>
    %cst_43 = arith.constant dense<0.000000e+00> : vector<22x22xf32>
    %63 = tpu.matmul %1, %57, %cst_43 {dimension_numbers = #tpu.dot_dimension_numbers<[1], [0], [0], [1], [0, 0, 1, 1], [], []>} : vector<22x32xf32>, vector<32x22xf32>, vector<22x22xf32> -> vector<22x22xf32>
    %cst_44 = arith.constant dense<0.000000e+00> : vector<22x22xf32>
    %64 = tpu.matmul %1, %59, %cst_44 {dimension_numbers = #tpu.dot_dimension_numbers<[1], [0], [0], [1], [0, 0, 1, 1], [], []>} : vector<22x32xf32>, vector<32x22xf32>, vector<22x22xf32> -> vector<22x22xf32>
    %65 = arith.mulf %60, %60 : vector<22x22xf32>
    %66 = arith.mulf %61, %61 : vector<22x22xf32>
    %67 = arith.mulf %60, %61 : vector<22x22xf32>
    %68 = arith.subf %62, %65 : vector<22x22xf32>
    %69 = arith.subf %63, %66 : vector<22x22xf32>
    %70 = arith.subf %64, %67 : vector<22x22xf32>
    %cst_45 = arith.constant 2.000000e+00 : f32
    %71 = vector.broadcast %cst_45 : f32 to vector<22x22xf32>
    %72 = arith.mulf %71, %67 : vector<22x22xf32>
    %cst_46 = arith.constant 6.502500e+00 : f32
    %73 = vector.broadcast %cst_46 : f32 to vector<22x22xf32>
    %74 = arith.addf %72, %73 : vector<22x22xf32>
    %cst_47 = arith.constant 2.000000e+00 : f32
    %75 = vector.broadcast %cst_47 : f32 to vector<22x22xf32>
    %76 = arith.mulf %75, %70 : vector<22x22xf32>
    %cst_48 = arith.constant 5.852250e+01 : f32
    %77 = vector.broadcast %cst_48 : f32 to vector<22x22xf32>
    %78 = arith.addf %76, %77 : vector<22x22xf32>
    %79 = arith.mulf %74, %78 : vector<22x22xf32>
    %80 = arith.addf %65, %66 : vector<22x22xf32>
    %cst_49 = arith.constant 6.502500e+00 : f32
    %81 = vector.broadcast %cst_49 : f32 to vector<22x22xf32>
    %82 = arith.addf %80, %81 : vector<22x22xf32>
    %83 = arith.addf %68, %69 : vector<22x22xf32>
    %cst_50 = arith.constant 5.852250e+01 : f32
    %84 = vector.broadcast %cst_50 : f32 to vector<22x22xf32>
    %85 = arith.addf %83, %84 : vector<22x22xf32>
    %86 = arith.mulf %82, %85 : vector<22x22xf32>
    %87 = tpu.reciprocal %86 : vector<22x22xf32> -> vector<22x22xf32>
    %88 = arith.mulf %79, %87 : vector<22x22xf32>
    %89 = vector.shape_cast %88 : vector<22x22xf32> to vector<1x22x22xf32>
    %cst_51 = arith.constant dense<0.000000e+00> : vector<1xf32>
    %90 = vector.multi_reduction <add>, %89, %cst_51 [1, 2] : vector<1x22x22xf32> to vector<1xf32>
    %91 = vector.shape_cast %90 : vector<1xf32> to vector<1x1x1xf32>
    %92 = vector.extract %91[0, 0, 0] : f32 from vector<1x1x1xf32>
    %93 = arith.addf %47, %92 : f32
    %c0_52 = arith.constant 0 : index
    %c2 = arith.constant 2 : index
    %c0_53 = arith.constant 0 : index
    %c0_54 = arith.constant 0 : index
    %94 = vector.load %arg1[%c0_52, %c2, %c0_53, %c0_54] : memref<1x3x32x32xf32, #tpu.memory_space<vmem>>, vector<1x1x32x32xf32>
    %95 = vector.shape_cast %94 : vector<1x1x32x32xf32> to vector<32x32xf32>
    %c0_55 = arith.constant 0 : index
    %c2_56 = arith.constant 2 : index
    %c0_57 = arith.constant 0 : index
    %c0_58 = arith.constant 0 : index
    %96 = vector.load %arg2[%c0_55, %c2_56, %c0_57, %c0_58] : memref<1x3x32x32xf32, #tpu.memory_space<vmem>>, vector<1x1x32x32xf32>
    %97 = vector.shape_cast %96 : vector<1x1x32x32xf32> to vector<32x32xf32>
    %cst_59 = arith.constant dense<0.000000e+00> : vector<32x22xf32>
    %98 = tpu.matmul %95, %0, %cst_59 {dimension_numbers = #tpu.dot_dimension_numbers<[1], [0], [0], [1], [0, 0, 1, 1], [], []>} : vector<32x32xf32>, vector<32x22xf32>, vector<32x22xf32> -> vector<32x22xf32>
    %cst_60 = arith.constant dense<0.000000e+00> : vector<32x22xf32>
    %99 = tpu.matmul %97, %0, %cst_60 {dimension_numbers = #tpu.dot_dimension_numbers<[1], [0], [0], [1], [0, 0, 1, 1], [], []>} : vector<32x32xf32>, vector<32x22xf32>, vector<32x22xf32> -> vector<32x22xf32>
    %100 = arith.mulf %95, %95 : vector<32x32xf32>
    %cst_61 = arith.constant dense<0.000000e+00> : vector<32x22xf32>
    %101 = tpu.matmul %100, %0, %cst_61 {dimension_numbers = #tpu.dot_dimension_numbers<[1], [0], [0], [1], [0, 0, 1, 1], [], []>} : vector<32x32xf32>, vector<32x22xf32>, vector<32x22xf32> -> vector<32x22xf32>
    %102 = arith.mulf %97, %97 : vector<32x32xf32>
    %cst_62 = arith.constant dense<0.000000e+00> : vector<32x22xf32>
    %103 = tpu.matmul %102, %0, %cst_62 {dimension_numbers = #tpu.dot_dimension_numbers<[1], [0], [0], [1], [0, 0, 1, 1], [], []>} : vector<32x32xf32>, vector<32x22xf32>, vector<32x22xf32> -> vector<32x22xf32>
    %104 = arith.mulf %95, %97 : vector<32x32xf32>
    %cst_63 = arith.constant dense<0.000000e+00> : vector<32x22xf32>
    %105 = tpu.matmul %104, %0, %cst_63 {dimension_numbers = #tpu.dot_dimension_numbers<[1], [0], [0], [1], [0, 0, 1, 1], [], []>} : vector<32x32xf32>, vector<32x22xf32>, vector<32x22xf32> -> vector<32x22xf32>
    %cst_64 = arith.constant dense<0.000000e+00> : vector<22x22xf32>
    %106 = tpu.matmul %1, %98, %cst_64 {dimension_numbers = #tpu.dot_dimension_numbers<[1], [0], [0], [1], [0, 0, 1, 1], [], []>} : vector<22x32xf32>, vector<32x22xf32>, vector<22x22xf32> -> vector<22x22xf32>
    %cst_65 = arith.constant dense<0.000000e+00> : vector<22x22xf32>
    %107 = tpu.matmul %1, %99, %cst_65 {dimension_numbers = #tpu.dot_dimension_numbers<[1], [0], [0], [1], [0, 0, 1, 1], [], []>} : vector<22x32xf32>, vector<32x22xf32>, vector<22x22xf32> -> vector<22x22xf32>
    %cst_66 = arith.constant dense<0.000000e+00> : vector<22x22xf32>
    %108 = tpu.matmul %1, %101, %cst_66 {dimension_numbers = #tpu.dot_dimension_numbers<[1], [0], [0], [1], [0, 0, 1, 1], [], []>} : vector<22x32xf32>, vector<32x22xf32>, vector<22x22xf32> -> vector<22x22xf32>
    %cst_67 = arith.constant dense<0.000000e+00> : vector<22x22xf32>
    %109 = tpu.matmul %1, %103, %cst_67 {dimension_numbers = #tpu.dot_dimension_numbers<[1], [0], [0], [1], [0, 0, 1, 1], [], []>} : vector<22x32xf32>, vector<32x22xf32>, vector<22x22xf32> -> vector<22x22xf32>
    %cst_68 = arith.constant dense<0.000000e+00> : vector<22x22xf32>
    %110 = tpu.matmul %1, %105, %cst_68 {dimension_numbers = #tpu.dot_dimension_numbers<[1], [0], [0], [1], [0, 0, 1, 1], [], []>} : vector<22x32xf32>, vector<32x22xf32>, vector<22x22xf32> -> vector<22x22xf32>
    %111 = arith.mulf %106, %106 : vector<22x22xf32>
    %112 = arith.mulf %107, %107 : vector<22x22xf32>
    %113 = arith.mulf %106, %107 : vector<22x22xf32>
    %114 = arith.subf %108, %111 : vector<22x22xf32>
    %115 = arith.subf %109, %112 : vector<22x22xf32>
    %116 = arith.subf %110, %113 : vector<22x22xf32>
    %cst_69 = arith.constant 2.000000e+00 : f32
    %117 = vector.broadcast %cst_69 : f32 to vector<22x22xf32>
    %118 = arith.mulf %117, %113 : vector<22x22xf32>
    %cst_70 = arith.constant 6.502500e+00 : f32
    %119 = vector.broadcast %cst_70 : f32 to vector<22x22xf32>
    %120 = arith.addf %118, %119 : vector<22x22xf32>
    %cst_71 = arith.constant 2.000000e+00 : f32
    %121 = vector.broadcast %cst_71 : f32 to vector<22x22xf32>
    %122 = arith.mulf %121, %116 : vector<22x22xf32>
    %cst_72 = arith.constant 5.852250e+01 : f32
    %123 = vector.broadcast %cst_72 : f32 to vector<22x22xf32>
    %124 = arith.addf %122, %123 : vector<22x22xf32>
    %125 = arith.mulf %120, %124 : vector<22x22xf32>
    %126 = arith.addf %111, %112 : vector<22x22xf32>
    %cst_73 = arith.constant 6.502500e+00 : f32
    %127 = vector.broadcast %cst_73 : f32 to vector<22x22xf32>
    %128 = arith.addf %126, %127 : vector<22x22xf32>
    %129 = arith.addf %114, %115 : vector<22x22xf32>
    %cst_74 = arith.constant 5.852250e+01 : f32
    %130 = vector.broadcast %cst_74 : f32 to vector<22x22xf32>
    %131 = arith.addf %129, %130 : vector<22x22xf32>
    %132 = arith.mulf %128, %131 : vector<22x22xf32>
    %133 = tpu.reciprocal %132 : vector<22x22xf32> -> vector<22x22xf32>
    %134 = arith.mulf %125, %133 : vector<22x22xf32>
    %135 = vector.shape_cast %134 : vector<22x22xf32> to vector<1x22x22xf32>
    %cst_75 = arith.constant dense<0.000000e+00> : vector<1xf32>
    %136 = vector.multi_reduction <add>, %135, %cst_75 [1, 2] : vector<1x22x22xf32> to vector<1xf32>
    %137 = vector.shape_cast %136 : vector<1xf32> to vector<1x1x1xf32>
    %138 = vector.extract %137[0, 0, 0] : f32 from vector<1x1x1xf32>
    %139 = arith.addf %93, %138 : f32
    %cst_76 = arith.constant 6.88705244E-4 : f32
    %140 = arith.mulf %139, %cst_76 : f32
    %141 = vector.broadcast %140 : f32 to vector<1x1x128xf32>
    %c0_77 = arith.constant 0 : index
    %c0_78 = arith.constant 0 : index
    %c0_79 = arith.constant 0 : index
    %142 = vector.load %arg5[%c0_77, %c0_78, %c0_79] : memref<1x1x128xf32, #tpu.memory_space<vmem>>, vector<1x1x128xf32>
    tpu.vector_store %arg5[%c0_77, %c0_78, %c0_79], %141 {strides = array<i32>} : memref<1x1x128xf32, #tpu.memory_space<vmem>>, vector<1x1x128xf32>,
    return
  }
  func.func @transform_0(%arg0: i32) -> (i32, i32, i32, i32) {
    %c0_i32 = arith.constant 0 : i32
    %c0_i32_0 = arith.constant 0 : i32
    %c0_i32_1 = arith.constant 0 : i32
    %c0_i32_2 = arith.constant 0 : i32
    return %arg0, %c0_i32, %c0_i32_0, %c0_i32_1 : i32, i32, i32, i32
  }
  func.func @transform_1(%arg0: i32) -> (i32, i32, i32, i32) {
    %c0_i32 = arith.constant 0 : i32
    %c0_i32_0 = arith.constant 0 : i32
    %c0_i32_1 = arith.constant 0 : i32
    %c0_i32_2 = arith.constant 0 : i32
    return %arg0, %c0_i32, %c0_i32_0, %c0_i32_1 : i32, i32, i32, i32
  }
  func.func @transform_2(%arg0: i32) -> (i32, i32) {
    %c0_i32 = arith.constant 0 : i32
    %c0_i32_0 = arith.constant 0 : i32
    %c0_i32_1 = arith.constant 0 : i32
    return %c0_i32, %c0_i32_0 : i32, i32
  }
  func.func @transform_3(%arg0: i32) -> (i32, i32) {
    %c0_i32 = arith.constant 0 : i32
    %c0_i32_0 = arith.constant 0 : i32
    %c0_i32_1 = arith.constant 0 : i32
    return %c0_i32, %c0_i32_0 : i32, i32
  }
  func.func @transform_4(%arg0: i32) -> (i32, i32, i32) {
    %c0_i32 = arith.constant 0 : i32
    %c0_i32_0 = arith.constant 0 : i32
    %c0_i32_1 = arith.constant 0 : i32
    return %arg0, %c0_i32, %c0_i32_0 : i32, i32, i32
  }
}

</mosaic_0001>

<bundles_post_ra>
// kernel: ssim_pallas.1
= control target key start
LH: loop header
LB: loop body
LE: loop exit
PB: predicated region body
PF: predicated region fallthrough
CT: control target
= control target key end

     0   :  { %9 = vsyncpa [#allocation3], 0  ;;  %s5119_s0 = inlined_call_operand.hbm [shape: f32[2,3,32,32], index: 0, kind: input, shape index: {}]   ;;  %s5120_s1 = inlined_call_operand.hbm [shape: f32[2,3,32,32], index: 1, kind: input, shape index: {}]   ;;  %s5121_s2 = inlined_call_operand.hbm [shape: f32[32,22], index: 2, kind: input, shape index: {}]   ;;  %s5122_s3 = inlined_call_operand.hbm [shape: f32[22,32], index: 3, kind: input, shape index: {}]   ;;  %s5123_s4 = inlined_call_operand.vmem [shape: f32[2,1,128], index: 4, kind: output, shape index: {}]  }
   0x1   :  { %11 = vsyncpa [#allocation3 + $0x1], 0 }
   0x2   :  { %12 = vsyncpa [#allocation5], 0 }
   0x3   :  { %14 = vsyncpa [#allocation5 + $0x1], 0 }
   0x4   :  { %15 = vsyncpa [#allocation8], 0  ;;  %s4445_s15 = smov 0   ;;  %s4447_s16 = smov 0  }
   0x5   :  { %s4449_s17 = smov 0   ;;  %s4451_s18 = smov 0  }
   0x6 LB: > { %s4464_s19 = sadd.s32 4294967295, %s4410_s18   ;;  %p41_p0 = scmp.ne.s32.totalorder %s4402_s16, %s4398_s15  ;;  %s4410_s18 = sphi %s4451_s18, %s5138_s18   ;;  %s4406_s17 = sphi %s4449_s17, %s5137_s17   ;;  %s4402_s16 = sphi %s4447_s16, %s5136_s16   ;;  %s4398_s15 = sphi %s4445_s15, %s5135_s15  }
   0x7   : > { %p5124_p1 = scmp.eq.s32.totalorder %s4464_s19, 0  ;;  %p3333_p2 = scmp.ge.s32.totalorder %s4410_s18, 1 }
   0x8   : > { %p146_p3 = scmp.lt.s32.totalorder %s4410_s18, 3  ;;  %s4412_s22 = smov [#allocation6]  }
   0x9   : > { %p4472_p4 = por %p5124_p1, %p41_p0  ;;  %s158_s23 = sshll.u32 %s4412_s22, 4  ;;  %s159_s23 = int_to_ptr.vmem [resolvable:$true] %s158_s23 }
   0xa   : > { %p4476_p5 = pnand %p3333_p2, %p146_p3  ;;  %s4413_s25 = smov [#allocation7]  }
   0xb   : > { %s5126_s20 = scalar_select %p4472_p4, 1, 0 }
   0xc   : > { %p4178_p6 = pneg %p4476_p5  ;;  %s171_s26 = sshll.u32 %s4413_s25, 4  ;;  %s172_s26 = int_to_ptr.vmem [resolvable:$true] %s171_s26 }
   0xd   : > { %s4267_s27 = scalar_lea.vmem %s159_s23, 512  ;;  %p4275_p12 = scmp.lt.s32.totalorder %s159_s23, %s159_s23 }
   0xe   : > { %p4484_p7 = pnand %p4178_p6, %p5124_p1  ;;  %p4268_p9 = scmp.ne.s32.totalorder %s159_s23, %s4267_s27 }
   0xf   : > { %p4276_p13 = scmp.lt.s32.totalorder %s4267_s27, %s4267_s27 }
  0x10   : > { %p4258_p8 = pneg %p4484_p7 }
  0x11   : > { %p4277_p0 = por %p4276_p13, %p4275_p12 }
  0x12   : > { %p4270_p10 = pnand %p4268_p9, %p4258_p8 }
  0x14   : > { %p4271_p11 = pneg %p4270_p10 }
  0x16   : > { %p4278_p2 = pnand %p4277_p0, %p4271_p11 }
  0x18   : > { %4281 = shalt.err (!%p4278_p2)
}
  0x19   : > { %s4414_s28 = smov 128   ;;  %s4415_s29 = smov 8  }
  0x1a   : > { %4181 = dma.hbm_to_vmem [thread:$0]  (!%p4484_p7), %s5121_s2, 512, %s159_s23, [#allocation5], %s4414_s28, %s4414_s28, %s4415_s29  }
  0x1b   : > { %s4293_s6 = scalar_lea.vmem %s172_s26, 384  ;;  %p4301_p10 = scmp.lt.s32.totalorder %s172_s26, %s172_s26 }
  0x1c   : > { %p4294_p3 = scmp.ne.s32.totalorder %s172_s26, %s4293_s6  ;;  %p4302_p11 = scmp.lt.s32.totalorder %s4293_s6, %s4293_s6 }
  0x1e   : > { %p4296_p6 = pnand %p4294_p3, %p4258_p8  ;;  %p4303_p12 = por %p4302_p11, %p4301_p10 }
  0x20   : > { %p4297_p9 = pneg %p4296_p6 }
  0x22   : > { %p4304_p13 = pnand %p4303_p12, %p4297_p9 }
  0x24   : > { %4307 = shalt.err (!%p4304_p13)
}
  0x25   : > { %4184 = dma.hbm_to_vmem [thread:$0]  (!%p4484_p7), %s5122_s3, 384, %s172_s26, [#allocation8], %s4414_s28, %s4414_s28, %s4415_s29  }
  0x26   : > { %s4513_s9 = sadd.s32 1, %s4410_s18   ;;  %s28_s10 = sadd.s32 1, %s4406_s17 }
  0x27   : > { %s25_s11 = ssub.s32 %s4410_s18, %s4513_s9  ;;  %p35_p8 = scmp.ne.s32.totalorder %s4406_s17, %s4402_s16 }
  0x28   : > { %p26_p0 = scmp.eq.s32.totalorder %s25_s11, 0  ;;  %p36_p2 = scmp.eq.s32.totalorder %s4410_s18, 0 }
  0x29   : > { %p4194_p3 = scmp.lt.s32.totalorder %s4410_s18, 2  ;;  %s185_s12 = sand.u32 1, %s4406_s17  }
  0x2a   : > { %s4524_s13 = scalar_select %p26_p0, %s4406_s17, %s28_s10  }
  0x2b   : > { %p37_p6 = por %p36_p2, %p35_p8  ;;  %s4526_s14 = smul.u32 96, %s185_s12 }
  0x2c   : > { %s206_s15 = sand.u32 1, %s4410_s18   ;;  %s4156_s22 = smul.u32 1536, %s4410_s18 }
  0x2d   : > { %p4530_p9 = pnand %p4194_p3, %p37_p6  ;;  %s189_s27 = scalar_lea.vmem [#allocation2], %s4526_s14 }
  0x2e   : > { %s4539_s26 = scalar_lea.hbm %s5119_s0, %s4156_s22  ;;  %s196_s30 = sshll.u32 %s189_s27, 4  ;;  %s4542_s30 = int_to_ptr.vmem [resolvable:$true] %s196_s30 }
  0x2f   : > { %s4544_s5 = scalar_lea.sflag [#allocation3], %s185_s12  ;;  %s4308_s6 = scalar_lea.hbm %s4539_s26, 1536 }
  0x30   : > { %p4309_p7 = scmp.ne.s32.totalorder %s4539_s26, %s4308_s6  ;;  %p4310_p10 = pneg %p4530_p9 }
  0x31   : > { %s4313_s10 = scalar_lea.hbm %s5119_s0, 3072  ;;  %p4314_p13 = scmp.lt.s32.totalorder %s4539_s26, %s5119_s0 }
  0x32   : > { %p4311_p11 = pnand %p4310_p10, %p4309_p7  ;;  %p4315_p8 = scmp.lt.s32.totalorder %s4313_s10, %s4308_s6 }
  0x34   : > { %p4312_p12 = pneg %p4311_p11  ;;  %p4316_p0 = por %p4315_p8, %p4314_p13 }
  0x36   : > { %p4317_p2 = pnand %p4316_p0, %p4312_p12 }
  0x38   : > { %4320 = shalt.err (!%p4317_p2)
}
  0x39   : > { %s4321_s12 = scalar_lea.vmem %s4542_s30, 1536  ;;  %s4416_s25 = smov [#allocation2]  }
  0x3a   : > { %p4322_p3 = scmp.ne.s32.totalorder %s4542_s30, %s4321_s12  ;;  %s4326_s27 = sshll.u32 %s4416_s25, 4  ;;  %s4327_s27 = int_to_ptr.vmem [resolvable:$false] %s4326_s27 }
  0x3b   : > { %s4328_s7 = scalar_lea.vmem %s4327_s27, 3072  ;;  %p4329_p11 = scmp.lt.s32.totalorder %s4542_s30, %s4327_s27 }
  0x3c   : > { %p4324_p6 = pnand %p4322_p3, %p4310_p10  ;;  %p4330_p1 = scmp.lt.s32.totalorder %s4328_s7, %s4321_s12 }
  0x3e   : > { %p4325_p7 = pneg %p4324_p6  ;;  %p4331_p4 = por %p4330_p1, %p4329_p11 }
  0x40   : > { %p4332_p13 = pnand %p4331_p4, %p4325_p7 }
  0x42   : > { %4335 = shalt.err (!%p4332_p13)
}
  0x43   : > { %4188 = dma.hbm_to_vmem [thread:$0]  (!%p4530_p9), %s4539_s26, 1536, %s4542_s30, %s4544_s5, %s4414_s28, %s4414_s28, %s4415_s29  }
  0x44   : > { %s4579_s10 = scalar_lea.hbm %s5120_s1, %s4156_s22  ;;  %s210_s11 = scalar_lea.vmem [#allocation4], %s4526_s14 }
  0x45   : > { %s217_s24 = sshll.u32 %s210_s11, 4  ;;  %s207_s12 = scalar_lea.sflag [#allocation5], %s206_s15  ;;  %s4582_s24 = int_to_ptr.vmem [resolvable:$true] %s217_s24 }
  0x46   : > { %s4336_s25 = scalar_lea.hbm %s4579_s10, 1536  ;;  %s4341_s22 = scalar_lea.hbm %s5120_s1, 3072 }
  0x47   : > { %p4337_p1 = scmp.ne.s32.totalorder %s4579_s10, %s4336_s25  ;;  %p4342_p8 = scmp.lt.s32.totalorder %s4579_s10, %s5120_s1 }
  0x48   : > { %p4343_p0 = scmp.lt.s32.totalorder %s4341_s22, %s4336_s25 }
  0x49   : > { %p4339_p4 = pnand %p4337_p1, %p4310_p10 }
  0x4a   : > { %p4344_p2 = por %p4343_p0, %p4342_p8 }
  0x4b   : > { %p4340_p12 = pneg %p4339_p4 }
  0x4d   : > { %p4345_p3 = pnand %p4344_p2, %p4340_p12 }
  0x4f   : > { %4348 = shalt.err (!%p4345_p3)
}
  0x50   : > { %s4349_s18 = scalar_lea.vmem %s4582_s24, 1536  ;;  %s4417_s14 = smov [#allocation4]  }
  0x51   : > { %p4350_p6 = scmp.ne.s32.totalorder %s4582_s24, %s4349_s18  ;;  %s4354_s15 = sshll.u32 %s4417_s14, 4  ;;  %s4355_s15 = int_to_ptr.vmem [resolvable:$false] %s4354_s15 }
  0x52   : > { %s4356_s7 = scalar_lea.vmem %s4355_s15, 3072  ;;  %p4357_p13 = scmp.lt.s32.totalorder %s4582_s24, %s4355_s15 }
  0x53   : > { %p4352_p7 = pnand %p4350_p6, %p4310_p10  ;;  %p4358_p1 = scmp.lt.s32.totalorder %s4356_s7, %s4349_s18 }
  0x55   : > { %p4353_p11 = pneg %p4352_p7  ;;  %p4359_p4 = por %p4358_p1, %p4357_p13 }
  0x57   : > { %p4360_p8 = pnand %p4359_p4, %p4353_p11 }
  0x59   : > { %4363 = shalt.err (!%p4360_p8)
}
  0x5a   : > { %4191 = dma.hbm_to_vmem [thread:$0]  (!%p4530_p9), %s4579_s10, 1536, %s4582_s24, %s207_s12, %s4414_s28, %s4414_s28, %s4415_s29  }
  0x5b   : > { %229 = sbr.rel (%p4476_p5) target bundleno = 1258 (0x4ea), region = 36  ;;  %s231_s6 = sand.u32 (!%p4476_p5), 1, %s4402_s16  }
  0x5c   : > { %s4159_s8 = smul.u32 (!%p4476_p5), 96, %s231_s6  ;;  %s232_s11 = scalar_lea.sflag (!%p4476_p5), [#allocation3], %s231_s6 }
  0x5d   : > { %p5130_p10 = scmp.ne.s32.totalorder (!%p4476_p5), %s5126_s20, 0 }
  0x5e   : > { %s4614_s25 = scalar_lea.vmem (!%p4476_p5), [#allocation2], %s4159_s8 }
  0x60   : > { %4381 = dma.done.wait (%p5130_p10), %s232_s11, 1536  }
  0x61   : > { %4383 = vsyncadd (%p5130_p10), %s232_s11, 4294965760  ;;  %s240_s23 = sand.u32 1, %s4464_s19   ;;  %s4621_s28 = scalar_lea.vmem [#allocation4], %s4159_s8 }
  0x62   : > { %s241_s26 = scalar_lea.sflag [#allocation5], %s240_s23 }
  0x63   : > { %4385 = dma.done.wait (%p5130_p10), %s241_s26, 1536  }
  0x64   : > { %4387 = vsyncadd (%p5130_p10), %s241_s26, 4294965760  ;;  %p5131_p5 = scmp.eq.s32.totalorder %s4464_s19, 0 }
  0x66   : > { %4389 = dma.done.wait (%p5131_p5), [#allocation5], 512   ;;  %p5132_p9 = pmov %p5131_p5 }
  0x67   : > { %p5133_p12 = pmov %p5131_p5 }
  0x68   : > { %4391 = vsyncadd (%p5132_p9), [#allocation5], 4294966784 }
  0x69   : > { %4393 = dma.done.wait (%p5133_p12), [#allocation8], 384   ;;  %p5134_p0 = pmov %p5131_p5 }
  0x6a   : > { %vm298_vm0 = vcmask 261120   ;;  %v4635_v0 = vld [vmem:[#allocation6 + $0x18] sm:$0xff]  ;;  %v4637_v1 = vld [vmem:[#allocation6 + $0x10] sm:$0xff]  ;;  %v290_v2 = vld [vmem:[%s4614_s25] sm:$0xff]  ;;  %v4418_v24 = vmov 0.0   ;;  %vm4419_vm1 = vmmov 0  }
  0x6b   : > { %4395 = vsyncadd (%p5134_p0), [#allocation8], 4294966912  ;;  %3690 = vmatprep.subr.mxu1 %v4635_v0  ;;  %3718 = vmatprep.subr.mxu0 %v4635_v0  ;;  %v4643_v3 = vld [vmem:[#allocation6 + $0x8] sm:$0xff]  ;;  %v4649_v4 = vld [vmem:[#allocation6] sm:$0xff]  ;;  %v493_v7 = vmul.f32 %v290_v2, %v290_v2  ;;  %vm1259_vm2 = vcmask 179200   ;;  %vm1263_vm3 = vcmask 177152  }
  0x6c   : > { %3691 = vmatpush3.msra.mxu1 %v4635_v0  ;;  %3698 = vmatprep.mubr.msk.f32.mxu1 %vm298_vm0, %v290_v2  ;;  %v291_v5 = vld [vmem:[%s4614_s25 + $0x8] sm:$0xff]  ;;  %v292_v6 = vld [vmem:[%s4614_s25 + $0x10] sm:$0xff]  ;;  %v293_v9 = vld [vmem:[%s4614_s25 + $0x18] sm:$0xff]  ;;  %p280_p2 = scmp.lt.s32.totalorder %s4464_s19, 1 }
  0x6d   : > { %3692 = vmatprep.subr.mxu1 %v4637_v1  ;;  %3719 = vmatpush3.msra.mxu0 %v4635_v0  ;;  %v494_v8 = vmul.f32 %v291_v5, %v291_v5  ;;  %v495_v10 = vmul.f32 %v292_v6, %v292_v6  ;;  %v294_v11 = vld [vmem:[%s4621_s28] sm:$0xff]  ;;  %v295_v12 = vld [vmem:[%s4621_s28 + $0x8] sm:$0xff]  ;;  %v496_v13 = vmul.f32 %v293_v9, %v293_v9  ;;  %v296_v14 = vld [vmem:[%s4621_s28 + $0x10] sm:$0xff] }
  0x6e   : > { %3693 = vmatpush3.msra.mxu1 %v4637_v1  ;;  %3720 = vmatprep.subr.mxu0 %v4637_v1  ;;  %v297_v15 = vld [vmem:[%s4621_s28 + $0x18] sm:$0xff]  ;;  %v594_v16 = vmul.f32 %v294_v11, %v294_v11  ;;  %v695_v17 = vmul.f32 %v294_v11, %v290_v2  ;;  %v595_v18 = vmul.f32 %v295_v12, %v295_v12  ;;  %v4719_v33 = vld [vmem:[#allocation7] sm:$0xff]  ;;  %v4727_v38 = vld [vmem:[#allocation7 + $0x8] sm:$0xff]  ;;  %s5140_s19 = smov (!%p280_p2, %s4464_s19), 1 }
  0x6f   : > { %3694 = vmatprep.subr.mxu1 %v4643_v3  ;;  %3721 = vmatpush3.msra.mxu0 %v4637_v1  ;;  %v696_v19 = vmul.f32 %v295_v12, %v291_v5  ;;  %v596_v20 = vmul.f32 %v296_v14, %v296_v14  ;;  %v697_v21 = vmul.f32 %v296_v14, %v292_v6  ;;  %v4737_v41 = vld [vmem:[#allocation7 + $0x10] sm:$0x3f]  ;;  %v3377_v48 = vld [vmem:[%s4614_s25 + $0x20] sm:$0xff]  ;;  %v3378_v49 = vld [vmem:[%s4614_s25 + $0x28] sm:$0xff]  ;;  %s282_s22 = scalar_lea.vmem %s5123_s4, %s5140_s19 }
  0x70   : > { %3695 = vmatpush3.msra.mxu1 %v4643_v3  ;;  %3722 = vmatprep.subr.mxu0 %v4643_v3  ;;  %v597_v22 = vmul.f32 %v297_v15, %v297_v15  ;;  %v698_v23 = vmul.f32 %v297_v15, %v293_v9  ;;  %v3379_v50 = vld [vmem:[%s4614_s25 + $0x30] sm:$0xff]  ;;  %v3381_v51 = vld [vmem:[%s4621_s28 + $0x20] sm:$0xff]  ;;  %v3380_v52 = vld [vmem:[%s4614_s25 + $0x38] sm:$0xff]  ;;  %v1480_v56 = vmul.f32 %v3377_v48, %v3377_v48 }
  0x71   : > { %3696 = vmatprep.subr.mxu1 %v4649_v4  ;;  %3723 = vmatpush3.msra.mxu0 %v4643_v3  ;;  %v3382_v53 = vld [vmem:[%s4621_s28 + $0x28] sm:$0xff]  ;;  %v3383_v54 = vld [vmem:[%s4621_s28 + $0x30] sm:$0xff]  ;;  %v3384_v55 = vld [vmem:[%s4621_s28 + $0x38] sm:$0xff]  ;;  %v1481_v57 = vmul.f32 %v3378_v49, %v3378_v49  ;;  %v1581_v58 = vmul.f32 %v3381_v51, %v3381_v51  ;;  %v1482_v59 = vmul.f32 %v3379_v50, %v3379_v50 }
  0x72   : > { %3697 = vmatpush3.msra.mxu1 %v4649_v4  ;;  %3724 = vmatprep.subr.mxu0 %v4649_v4  ;;  %v1582_v60 = vmul.f32 %v3382_v53, %v3382_v53  ;;  %v1583_v61 = vmul.f32 %v3383_v54, %v3383_v54  ;;  %v1483_v62 = vmul.f32 %v3380_v52, %v3380_v52 }
  0x73   : > { %3699 = vmatmul.mubr.msk.f32.vlgmr.msra.gmra.mxu1 %vm298_vm0, %v291_v5  ;;  %3704 = vmatprep.subr.mxu1 %v4635_v0  ;;  %v1682_v63 = vmul.f32 %v3381_v51, %v3377_v48  ;;  %v1584_v2 = vmul.f32 %v3384_v55, %v3384_v55  ;;  %v1683_v5 = vmul.f32 %v3382_v53, %v3378_v49 }
  0x74   : > { %3705 = vmatpush3.msra.mxu1 %v4635_v0  ;;  %3701 = vmatprep.mubr.msk.f32.mxu1 %vm298_vm0, %v292_v6  ;;  %v1684_v6 = vmul.f32 %v3383_v54, %v3379_v50 }
  0x75   : > { %3706 = vmatprep.subr.mxu1 %v4637_v1  ;;  %3725 = vmatpush3.msra.mxu0 %v4649_v4 }
  0x76   : > { %3707 = vmatpush3.msra.mxu1 %v4637_v1  ;;  %3726 = vmatprep.mubr.msk.f32.mxu0 %vm298_vm0, %v493_v7  ;;  %v1685_v7 = vmul.f32 %v3384_v55, %v3380_v52 }
  0x77   : > { %3702 = vmatmul.mubr.msk.f32.gmra.mxu1 %vm298_vm0, %v293_v9  ;;  %3708 = vmatprep.subr.mxu1 %v4643_v3 }
  0x78   : > { %3709 = vmatpush3.msra.mxu1 %v4643_v3  ;;  %3727 = vmatmul.mubr.msk.f32.vlgmr.msra.gmra.mxu0 %vm298_vm0, %v494_v8 }
  0x79   : > { %3710 = vmatprep.subr.mxu1 %v4649_v4  ;;  %3712 = vmatprep.mubr.msk.f32.mxu1 %vm298_vm0, %v294_v11 }
  0x7a   : > { %3711 = vmatpush3.msra.mxu1 %v4649_v4  ;;  %3729 = vmatprep.mubr.msk.f32.mxu0 %vm298_vm0, %v495_v10 }
  0x7b   : > { %3713 = vmatmul.mubr.msk.f32.vlgmr.msra.gmra.mxu1 %vm298_vm0, %v295_v12  ;;  %3732 = vmatprep.subr.mxu1 %v4635_v0 }
  0x7c   : > { %3730 = vmatmul.mubr.msk.f32.gmra.mxu0 %vm298_vm0, %v496_v13  ;;  %3746 = vmatprep.subr.mxu0 %v4635_v0 }
  0x7d   : > { %3715 = vmatprep.mubr.msk.f32.mxu1 %vm298_vm0, %v296_v14  ;;  %3733 = vmatpush3.msra.mxu1 %v4635_v0 }
  0x7e   : > { %3747 = vmatpush3.msra.mxu0 %v4635_v0  ;;  %3734 = vmatprep.subr.mxu1 %v4637_v1 }
  0x7f   : > { %3716 = vmatmul.mubr.msk.f32.gmra.mxu1 %vm298_vm0, %v297_v15  ;;  %3748 = vmatprep.subr.mxu0 %v4637_v1 }
  0x80   : > { %3735 = vmatpush3.msra.mxu1 %v4637_v1  ;;  %3749 = vmatpush3.msra.mxu0 %v4637_v1 }
  0x81   : > { %3736 = vmatprep.subr.mxu1 %v4643_v3  ;;  %3750 = vmatprep.subr.mxu0 %v4643_v3 }
  0x82   : > { %3737 = vmatpush3.msra.mxu1 %v4643_v3  ;;  %3751 = vmatpush3.msra.mxu0 %v4643_v3 }
  0x83   : > { %3738 = vmatprep.subr.mxu1 %v4649_v4  ;;  %3752 = vmatprep.subr.mxu0 %v4649_v4 }
  0x84   : > { %3739 = vmatpush3.msra.mxu1 %v4649_v4  ;;  %3740 = vmatprep.mubr.msk.f32.mxu1 %vm298_vm0, %v594_v16 }
  0x85   : > { %3753 = vmatpush3.msra.mxu0 %v4649_v4  ;;  %3754 = vmatprep.mubr.msk.f32.mxu0 %vm298_vm0, %v695_v17 }
  0x86   : > { %3741 = vmatmul.mubr.msk.f32.vlgmr.msra.gmra.mxu1 %vm298_vm0, %v595_v18  ;;  %3755 = vmatmul.mubr.msk.f32.vlgmr.msra.gmra.mxu0 %vm298_vm0, %v696_v19 }
  0x87   : > { %3743 = vmatprep.mubr.msk.f32.mxu1 %vm298_vm0, %v596_v20  ;;  %3757 = vmatprep.mubr.msk.f32.mxu0 %vm298_vm0, %v697_v21 }
  0x88   : > { %3760 = vmatprep.subr.mxu1 %v4418_v24  ;;  %3777 = vmatprep.subr.mxu0 %v4418_v24 }
  0x8a   : > { %3744 = vmatmul.mubr.msk.f32.gmra.mxu1 %vm298_vm0, %v597_v22  ;;  %3758 = vmatmul.mubr.msk.f32.gmra.mxu0 %vm298_vm0, %v698_v23 }
  0x8b   : > { %3768 = vmatprep.mubr.msk.f32.mxu1 %vm4419_vm1, %v4418_v24  ;;  %3785 = vmatprep.mubr.msk.f32.mxu0 %vm4419_vm1, %v4418_v24 }
 0x133   : > { %v3700_v25 = vpop.f32.mrf.mxu1 }
 0x135   : > { %v377_v26 = vpop.f32.mrf.mxu1 }
 0x137   : > { %v3703_v27 = vpop.f32.mrf.mxu1 }
 0x138   : > { %3761 = vmatpush3.msra.mxu1 %v3703_v27  ;;  %v3728_v28 = vpop.f32.mrf.mxu0 }
 0x139   : > { %v387_v29 = vpop.f32.mrf.mxu1  ;;  %3762 = vmatprep.subr.mxu1 %v4418_v24 }
 0x13a   : > { %3763 = vmatpush3.msra.mxu1 %v387_v29  ;;  %v575_v30 = vpop.f32.mrf.mxu0 }
 0x13b   : > { %v3714_v31 = vpop.f32.mrf.mxu1  ;;  %3764 = vmatprep.subr.mxu1 %v4418_v24 }
 0x13c   : > { %3765 = vmatpush3.msra.mxu1 %v3700_v25  ;;  %v3731_v32 = vpop.f32.mrf.mxu0 }
 0x13d   : > { %v474_v34 = vpop.f32.mrf.mxu1  ;;  %3766 = vmatprep.subr.mxu1 %v4418_v24 }
 0x13e   : > { %3767 = vmatpush3.msra.mxu1 %v377_v26  ;;  %v585_v36 = vpop.f32.mrf.mxu0 }
 0x13f   : > { %v3717_v35 = vpop.f32.mrf.mxu1  ;;  %3769 = vmatmul.mubr.msk.f32.vlgmr.msra.gmra.mxu1 %vm298_vm0, %v4719_v33  ;;  %3794 = vmatprep.subr.mxu1 %v4418_v24 }
 0x140   : > { %3778 = vmatpush3.msra.mxu0 %v3717_v35  ;;  %3795 = vmatpush3.msra.mxu1 %v3731_v32 }
 0x141   : > { %v484_v37 = vpop.f32.mrf.mxu1  ;;  %3779 = vmatprep.subr.mxu0 %v4418_v24  ;;  %3796 = vmatprep.subr.mxu1 %v4418_v24 }
 0x142   : > { %3771 = vmatprep.mubr.msk.f32.mxu1 %vm4419_vm1, %v4418_v24  ;;  %3780 = vmatpush3.msra.mxu0 %v484_v37 }
 0x143   : > { %3797 = vmatpush3.msra.mxu1 %v585_v36  ;;  %3781 = vmatprep.subr.mxu0 %v4418_v24 }
 0x144   : > { %3772 = vmatmul.mubr.msk.f32.gmra.mxu1 %vm298_vm0, %v4727_v38  ;;  %3798 = vmatprep.subr.mxu1 %v4418_v24 }
 0x145   : > { %3782 = vmatpush3.msra.mxu0 %v3714_v31  ;;  %3799 = vmatpush3.msra.mxu1 %v3728_v28 }
 0x146   : > { %v3742_v39 = vpop.f32.mrf.mxu1  ;;  %v3756_v40 = vpop.f32.mrf.mxu0  ;;  %3783 = vmatprep.subr.mxu0 %v4418_v24  ;;  %3800 = vmatprep.subr.mxu1 %v4418_v24 }
 0x147   : > { %3774 = vmatprep.mubr.msk.f32.mxu1 %vm4419_vm1, %v4418_v24  ;;  %3784 = vmatpush3.msra.mxu0 %v474_v34 }
 0x148   : > { %3801 = vmatpush3.msra.mxu1 %v575_v30  ;;  %v676_v42 = vpop.f32.mrf.mxu1  ;;  %v777_v43 = vpop.f32.mrf.mxu0  ;;  %3786 = vmatmul.mubr.msk.f32.vlgmr.msra.gmra.mxu0 %vm298_vm0, %v4719_v33 }
 0x149   : > { %3775 = vmatmul.mubr.msk.f32.gmra.mxu1 %vm298_vm0, %v4737_v41  ;;  %3811 = vmatprep.subr.mxu0 %v4418_v24 }
 0x14a   : > { %v3745_v44 = vpop.f32.mrf.mxu1  ;;  %v3759_v45 = vpop.f32.mrf.mxu0  ;;  %3788 = vmatprep.mubr.msk.f32.mxu0 %vm4419_vm1, %v4418_v24  ;;  %3802 = vmatprep.mubr.msk.f32.mxu1 %vm4419_vm1, %v4418_v24 }
 0x14b   : > { %3812 = vmatpush3.msra.mxu0 %v3745_v44  ;;  %3828 = vmatprep.subr.mxu1 %v4418_v24 }
 0x14c   : > { %v686_v46 = vpop.f32.mrf.mxu1  ;;  %3789 = vmatmul.mubr.msk.f32.gmra.mxu0 %vm298_vm0, %v4727_v38  ;;  %3813 = vmatprep.subr.mxu0 %v4418_v24  ;;  %v787_v47 = vpop.f32.mrf.mxu0 }
 0x14d   : > { %3803 = vmatmul.mubr.msk.f32.vlgmr.msra.gmra.mxu1 %vm298_vm0, %v4719_v33  ;;  %3814 = vmatpush3.msra.mxu0 %v686_v46 }
 0x14e   : > { %3829 = vmatpush3.msra.mxu1 %v3759_v45  ;;  %3815 = vmatprep.subr.mxu0 %v4418_v24 }
 0x14f   : > { %3830 = vmatprep.subr.mxu1 %v4418_v24  ;;  %3791 = vmatprep.mubr.msk.f32.mxu0 %vm4419_vm1, %v4418_v24 }
 0x150   : > { %3831 = vmatpush3.msra.mxu1 %v787_v47  ;;  %3805 = vmatprep.mubr.msk.f32.mxu1 %vm4419_vm1, %v4418_v24 }
 0x151   : > { %3816 = vmatpush3.msra.mxu0 %v3742_v39  ;;  %3832 = vmatprep.subr.mxu1 %v4418_v24 }
 0x152   : > { %3792 = vmatmul.mubr.msk.f32.gmra.mxu0 %vm298_vm0, %v4737_v41  ;;  %3806 = vmatmul.mubr.msk.f32.gmra.mxu1 %vm298_vm0, %v4727_v38 }
 0x153   : > { %3817 = vmatprep.subr.mxu0 %v4418_v24  ;;  %3833 = vmatpush3.msra.mxu1 %v3756_v40 }
 0x154   : > { %3818 = vmatpush3.msra.mxu0 %v676_v42  ;;  %3834 = vmatprep.subr.mxu1 %v4418_v24 }
 0x155   : > { %3835 = vmatpush3.msra.mxu1 %v777_v43  ;;  %3808 = vmatprep.mubr.msk.f32.mxu1 %vm4419_vm1, %v4418_v24 }
 0x156   : > { %3819 = vmatprep.mubr.msk.f32.mxu0 %vm4419_vm1, %v4418_v24  ;;  %3809 = vmatmul.mubr.msk.f32.gmra.mxu1 %vm298_vm0, %v4737_v41 }
 0x157   : > { %3820 = vmatmul.mubr.msk.f32.vlgmr.msra.gmra.mxu0 %vm298_vm0, %v4719_v33  ;;  %3836 = vmatprep.mubr.msk.f32.mxu1 %vm4419_vm1, %v4418_v24 }
 0x158   : > { %3822 = vmatprep.mubr.msk.f32.mxu0 %vm4419_vm1, %v4418_v24  ;;  %3845 = vmatprep.subr.mxu0 %v4635_v0 }
 0x159   : > { %3859 = vmatprep.subr.mxu1 %v4635_v0  ;;  %3846 = vmatpush3.msra.mxu0 %v4635_v0 }
 0x15a   : > { %3837 = vmatmul.mubr.msk.f32.vlgmr.msra.gmra.mxu1 %vm298_vm0, %v4719_v33  ;;  %3847 = vmatprep.subr.mxu0 %v4637_v1 }
 0x15b   : > { %3823 = vmatmul.mubr.msk.f32.gmra.mxu0 %vm298_vm0, %v4727_v38  ;;  %3860 = vmatpush3.msra.mxu1 %v4635_v0 }
 0x15c   : > { %3825 = vmatprep.mubr.msk.f32.mxu0 %vm4419_vm1, %v4418_v24  ;;  %3839 = vmatprep.mubr.msk.f32.mxu1 %vm4419_vm1, %v4418_v24 }
 0x15d   : > { %3848 = vmatpush3.msra.mxu0 %v4637_v1  ;;  %3861 = vmatprep.subr.mxu1 %v4637_v1 }
 0x15e   : > { %3840 = vmatmul.mubr.msk.f32.gmra.mxu1 %vm298_vm0, %v4727_v38  ;;  %3849 = vmatprep.subr.mxu0 %v4643_v3 }
 0x15f   : > { %3826 = vmatmul.mubr.msk.f32.gmra.mxu0 %vm298_vm0, %v4737_v41  ;;  %3862 = vmatpush3.msra.mxu1 %v4637_v1 }
 0x160   : > { %3850 = vmatpush3.msra.mxu0 %v4643_v3  ;;  %3863 = vmatprep.subr.mxu1 %v4643_v3 }
 0x161   : > { %3851 = vmatprep.subr.mxu0 %v4649_v4  ;;  %3842 = vmatprep.mubr.msk.f32.mxu1 %vm4419_vm1, %v4418_v24 }
 0x162   : > { %3852 = vmatpush3.msra.mxu0 %v4649_v4  ;;  %3853 = vmatprep.mubr.msk.f32.mxu0 %vm298_vm0, %v3377_v48 }
 0x163   : > { %3864 = vmatpush3.msra.mxu1 %v4643_v3  ;;  %3854 = vmatmul.mubr.msk.f32.vlgmr.msra.gmra.mxu0 %vm298_vm0, %v3378_v49 }
 0x164   : > { %3843 = vmatmul.mubr.msk.f32.gmra.mxu1 %vm298_vm0, %v4737_v41  ;;  %3865 = vmatprep.subr.mxu1 %v4649_v4 }
 0x165   : > { %3866 = vmatpush3.msra.mxu1 %v4649_v4  ;;  %3873 = vmatprep.subr.mxu0 %v4635_v0 }
 0x166   : > { %3856 = vmatprep.mubr.msk.f32.mxu0 %vm298_vm0, %v3379_v50  ;;  %3867 = vmatprep.mubr.msk.f32.mxu1 %vm298_vm0, %v3381_v51 }
 0x167   : > { %3874 = vmatpush3.msra.mxu0 %v4635_v0  ;;  %3887 = vmatprep.subr.mxu1 %v4635_v0 }
 0x168   : > { %3857 = vmatmul.mubr.msk.f32.gmra.mxu0 %vm298_vm0, %v3380_v52  ;;  %3868 = vmatmul.mubr.msk.f32.vlgmr.msra.gmra.mxu1 %vm298_vm0, %v3382_v53 }
 0x169   : > { %3875 = vmatprep.subr.mxu0 %v4637_v1  ;;  %3888 = vmatpush3.msra.mxu1 %v4635_v0 }
 0x16a   : > { %3876 = vmatpush3.msra.mxu0 %v4637_v1  ;;  %3889 = vmatprep.subr.mxu1 %v4637_v1 }
 0x16b   : > { %3877 = vmatprep.subr.mxu0 %v4643_v3  ;;  %3870 = vmatprep.mubr.msk.f32.mxu1 %vm298_vm0, %v3383_v54 }
 0x16c   : > { %3878 = vmatpush3.msra.mxu0 %v4643_v3  ;;  %3890 = vmatpush3.msra.mxu1 %v4637_v1 }
 0x16d   : > { %3871 = vmatmul.mubr.msk.f32.gmra.mxu1 %vm298_vm0, %v3384_v55  ;;  %3879 = vmatprep.subr.mxu0 %v4649_v4 }
 0x16e   : > { %3891 = vmatprep.subr.mxu1 %v4643_v3  ;;  %3880 = vmatpush3.msra.mxu0 %v4649_v4 }
 0x16f   : > { %3881 = vmatprep.mubr.msk.f32.mxu0 %vm298_vm0, %v1480_v56  ;;  %3892 = vmatpush3.msra.mxu1 %v4643_v3 }
 0x170   : > { %3882 = vmatmul.mubr.msk.f32.vlgmr.msra.gmra.mxu0 %vm298_vm0, %v1481_v57  ;;  %3893 = vmatprep.subr.mxu1 %v4649_v4 }
 0x171   : > { %3894 = vmatpush3.msra.mxu1 %v4649_v4  ;;  %3895 = vmatprep.mubr.msk.f32.mxu1 %vm298_vm0, %v1581_v58 }
 0x172   : > { %3896 = vmatmul.mubr.msk.f32.vlgmr.msra.gmra.mxu1 %vm298_vm0, %v1582_v60  ;;  %3884 = vmatprep.mubr.msk.f32.mxu0 %vm298_vm0, %v1482_v59 }
 0x173   : > { %3901 = vmatprep.subr.mxu0 %v4635_v0  ;;  %3898 = vmatprep.mubr.msk.f32.mxu1 %vm298_vm0, %v1583_v61 }
 0x174   : > { %3885 = vmatmul.mubr.msk.f32.gmra.mxu0 %vm298_vm0, %v1483_v62  ;;  %3915 = vmatprep.subr.mxu1 %v4418_v24 }
 0x175   : > { %3902 = vmatpush3.msra.mxu0 %v4635_v0  ;;  %3909 = vmatprep.mubr.msk.f32.mxu0 %vm298_vm0, %v1682_v63 }
 0x176   : > { %3899 = vmatmul.mubr.msk.f32.gmra.mxu1 %vm298_vm0, %v1584_v2  ;;  %3903 = vmatprep.subr.mxu0 %v4637_v1 }
 0x177   : > { %3904 = vmatpush3.msra.mxu0 %v4637_v1  ;;  %3923 = vmatprep.mubr.msk.f32.mxu1 %vm4419_vm1, %v4418_v24 }
 0x178   : > { %3905 = vmatprep.subr.mxu0 %v4643_v3 }
 0x179   : > { %3906 = vmatpush3.msra.mxu0 %v4643_v3 }
 0x17a   : > { %3907 = vmatprep.subr.mxu0 %v4649_v4 }
 0x17b   : > { %3908 = vmatpush3.msra.mxu0 %v4649_v4 }
 0x17c   : > { %3910 = vmatmul.mubr.msk.f32.vlgmr.msra.gmra.mxu0 %vm298_vm0, %v1683_v5  ;;  %3932 = vmatprep.subr.mxu0 %v4418_v24 }
 0x17d   : > { %3912 = vmatprep.mubr.msk.f32.mxu0 %vm298_vm0, %v1684_v6 }
 0x180   : > { %3913 = vmatmul.mubr.msk.f32.gmra.mxu0 %vm298_vm0, %v1685_v7 }
 0x181   : > { %3940 = vmatprep.mubr.msk.f32.mxu0 %vm4419_vm1, %v4418_v24 }
 0x1ff   : > { %v871_v8 = vpop.f32.mrf.mxu1 }
 0x200   : > { %v1205_v25 = vmul.f32 %v871_v8, %v871_v8 }
 0x201   : > { %v3770_v9 = vpop.f32.mrf.mxu1 }
 0x204   : > { %v876_v10 = vpop.f32.mrf.mxu1 }
 0x205   : > { %v1206_v34 = vmul.f32 %v876_v10, %v876_v10 }
 0x206   : > { %v3773_v11 = vpop.f32.mrf.mxu1 }
 0x208   : > { %v951_v12 = vpop.f32.mrf.mxu0 }
 0x209   : > { %v881_v13 = vpop.f32.mrf.mxu1  ;;  %v1208_v26 = vmul.f32 %v951_v12, %v951_v12  ;;  %v1211_v11 = vmul.f32 %v951_v12, %v871_v8 }
 0x20a   : > { %v3787_v14 = vpop.f32.mrf.mxu0  ;;  %v1207_v49 = vmul.f32 %v881_v13, %v881_v13 }
 0x20b   : > { %v3776_v15 = vpop.f32.mrf.mxu1  ;;  %v1238_v39 = vadd.f32 %v1208_v26, %v1205_v25  ;;  %v1223_v12 = vmul.f32 2.0, %v1211_v11 }
 0x20c   : > { %v956_v16 = vpop.f32.mrf.mxu0 }
 0x20d   : > { %v1031_v17 = vpop.f32.mrf.mxu1  ;;  %v1209_v28 = vmul.f32 %v956_v16, %v956_v16  ;;  %v1241_v52 = vadd.f32 6.5025, %v1238_v39  ;;  %v1212_v2 = vmul.f32 %v956_v16, %v876_v10 }
 0x20e   : > { %v3790_v18 = vpop.f32.mrf.mxu0  ;;  %v1214_v30 = vsub.f32 %v1031_v17, %v1205_v25 }
 0x20f   : > { %v3804_v19 = vpop.f32.mrf.mxu1  ;;  %v1239_v40 = vadd.f32 %v1209_v28, %v1206_v34 }
 0x211   : > { %v1242_v53 = vadd.f32 6.5025, %v1239_v40 }
 0x212   : > { %v961_v20 = vpop.f32.mrf.mxu0  ;;  %v1036_v21 = vpop.f32.mrf.mxu1 }
 0x213   : > { %v1210_v43 = vmul.f32 %v961_v20, %v961_v20  ;;  %v1215_v44 = vsub.f32 %v1036_v21, %v1206_v34  ;;  %v1213_v17 = vmul.f32 %v961_v20, %v881_v13 }
 0x214   : > { %v3793_v22 = vpop.f32.mrf.mxu0  ;;  %v3807_v23 = vpop.f32.mrf.mxu1 }
 0x215   : > { %v1240_v55 = vadd.f32 %v1210_v43, %v1207_v49 }
 0x216   : > { %v1041_v27 = vpop.f32.mrf.mxu1 }
 0x217   : > { %v1111_v29 = vpop.f32.mrf.mxu0  ;;  %v1216_v56 = vsub.f32 %v1041_v27, %v1207_v49  ;;  %v1243_v6 = vadd.f32 6.5025, %v1240_v55  ;;  %v1224_v27 = vmul.f32 2.0, %v1212_v2 }
 0x218   : > { %v1217_v31 = vsub.f32 %v1111_v29, %v1208_v26  ;;  %v3810_v32 = vpop.f32.mrf.mxu1  ;;  %v1225_v29 = vmul.f32 2.0, %v1213_v17 }
 0x219   : > { %v3821_v35 = vpop.f32.mrf.mxu0 }
 0x21a   : > { %v1244_v36 = vadd.f32 %v1217_v31, %v1214_v30  ;;  %v1191_v37 = vpop.f32.mrf.mxu1  ;;  %v1227_v30 = vadd.f32 6.5025, %v1224_v27 }
 0x21b   : > { %v1116_v42 = vpop.f32.mrf.mxu0  ;;  %v1220_v21 = vsub.f32 %v1191_v37, %v1211_v11  ;;  %v1226_v37 = vadd.f32 6.5025, %v1223_v12 }
 0x21c   : > { %v1218_v45 = vsub.f32 %v1116_v42, %v1209_v28  ;;  %v3838_v46 = vpop.f32.mrf.mxu1  ;;  %v1247_v47 = vadd.f32 58.5225, %v1244_v36  ;;  %v1228_v42 = vadd.f32 6.5025, %v1225_v29 }
 0x21d   : > { %v3824_v48 = vpop.f32.mrf.mxu0  ;;  %v1229_v28 = vmul.f32 2.0, %v1220_v21 }
 0x21e   : > { %v1245_v50 = vadd.f32 %v1218_v45, %v1215_v44  ;;  %v1196_v51 = vpop.f32.mrf.mxu1  ;;  %v1250_v60 = vmul.f32 %v1247_v47, %v1241_v52 }
 0x21f   : > { %v1121_v54 = vpop.f32.mrf.mxu0  ;;  %v1221_v14 = vsub.f32 %v1196_v51, %v1212_v2  ;;  %v1232_v31 = vadd.f32 58.5225, %v1229_v28 }
 0x220   : > { %v1248_v57 = vadd.f32 58.5225, %v1245_v50  ;;  %v1219_v58 = vsub.f32 %v1121_v54, %v1210_v43  ;;  %v3841_v59 = vpop.f32.mrf.mxu1 }
 0x221   : > { %v3827_v61 = vpop.f32.mrf.mxu0  ;;  %v1230_v26 = vmul.f32 2.0, %v1221_v14  ;;  %v1235_v45 = vmul.f32 %v1232_v31, %v1226_v37  ;;  %v3425_v14 = vld [vmem:[%s4621_s28 + $0x48] sm:$0xff] }
 0x222   : > { %v1251_v62 = vmul.f32 %v1248_v57, %v1242_v53  ;;  %v1246_v63 = vadd.f32 %v1219_v58, %v1216_v56  ;;  %v2558_v21 = vmul.f32 %v3425_v14, %v3425_v14 }
 0x223   : > { %v3855_v5 = vpop.f32.mrf.mxu0  ;;  %v1233_v13 = vadd.f32 58.5225, %v1230_v26 }
 0x224   : > { %4235 = vrcp.f32 %v1251_v62  ;;  %v1249_v7 = vadd.f32 58.5225, %v1246_v63  ;;  %v1201_v9 = vpop.f32.mrf.mxu1 }
 0x225   : > { %4237 = vrcp.f32 %v1250_v60  ;;  %v1364_v15 = vpop.f32.mrf.mxu0  ;;  %v1222_v22 = vsub.f32 %v1201_v9, %v1213_v17  ;;  %v1236_v39 = vmul.f32 %v1233_v13, %v1227_v30  ;;  %v3424_v9 = vld [vmem:[%s4621_s28 + $0x40] sm:$0xff] }
 0x226   : > { %v1252_v18 = vmul.f32 %v1249_v7, %v1243_v6  ;;  %v3844_v19 = vpop.f32.mrf.mxu1  ;;  %v3421_v6 = vld [vmem:[%s4614_s25 + $0x48] sm:$0xff]  ;;  %v3423_v7 = vld [vmem:[%s4614_s25 + $0x58] sm:$0xff] }
 0x227   : > { %v1231_v8 = vmul.f32 2.0, %v1222_v22  ;;  %v2457_v11 = vmul.f32 %v3421_v6, %v3421_v6  ;;  %v2459_v17 = vmul.f32 %v3423_v7, %v3423_v7  ;;  %v2557_v19 = vmul.f32 %v3424_v9, %v3424_v9 }
 0x228   : > { %4239 = vrcp.f32 %v1252_v18  ;;  %v3858_v23 = vpop.f32.mrf.mxu0  ;;  %v3869_v25 = vpop.f32.mrf.mxu1  ;;  %v3427_v18 = vld [vmem:[%s4621_s28 + $0x58] sm:$0xff] }
 0x229   : > { %3916 = vmatpush3.msra.mxu1 %v3858_v23  ;;  %v1234_v34 = vadd.f32 58.5225, %v1231_v8  ;;  %v2560_v26 = vmul.f32 %v3427_v18, %v3427_v18 }
 0x22a   : > { %v1374_v10 = vpop.f32.mrf.mxu0  ;;  %v1461_v16 = vpop.f32.mrf.mxu1  ;;  %3917 = vmatprep.subr.mxu1 %v4418_v24 }
 0x22b   : > { %3918 = vmatpush3.msra.mxu1 %v1374_v10  ;;  %v1237_v47 = vmul.f32 %v1234_v34, %v1228_v42 }
 0x22c   : > { %3919 = vmatprep.subr.mxu1 %v4418_v24 }
 0x22d   : > { %v3872_v20 = vpop.f32.mrf.mxu1  ;;  %3920 = vmatpush3.msra.mxu1 %v3855_v5  ;;  %v3420_v5 = vld [vmem:[%s4614_s25 + $0x40] sm:$0xff] }
 0x22e   : > { %3933 = vmatpush3.msra.mxu0 %v3872_v20  ;;  %3921 = vmatprep.subr.mxu1 %v4418_v24  ;;  %v2658_v23 = vmul.f32 %v3424_v9, %v3420_v5 }
 0x22f   : > { %v1471_v32 = vpop.f32.mrf.mxu1  ;;  %3934 = vmatprep.subr.mxu0 %v4418_v24  ;;  %3922 = vmatpush3.msra.mxu1 %v1364_v15  ;;  %v3426_v15 = vld [vmem:[%s4621_s28 + $0x50] sm:$0xff] }
 0x230   : > { %v3883_v35 = vpop.f32.mrf.mxu0  ;;  %3935 = vmatpush3.msra.mxu0 %v1471_v32  ;;  %3924 = vmatmul.mubr.msk.f32.vlgmr.msra.gmra.mxu1 %vm298_vm0, %v4719_v33  ;;  %v2559_v22 = vmul.f32 %v3426_v15, %v3426_v15 }
 0x231   : > { %v4236_v36 = vpop.eup %4235  ;;  %3936 = vmatprep.subr.mxu0 %v4418_v24  ;;  %3949 = vmatprep.subr.mxu1 %v4418_v24 }
 0x232   : > { %v4238_v40 = vpop.eup %4237  ;;  %v1562_v43 = vpop.f32.mrf.mxu0  ;;  %3937 = vmatpush3.msra.mxu0 %v3869_v25  ;;  %3926 = vmatprep.mubr.msk.f32.mxu1 %vm4419_vm1, %v4418_v24  ;;  %v1257_v46 = vmul.f32 %v4236_v36, %v1236_v39  ;;  %v2659_v25 = vmul.f32 %v3425_v14, %v3421_v6 }
 0x233   : > { %v3897_v44 = vpop.f32.mrf.mxu1  ;;  %3938 = vmatprep.subr.mxu0 %v4418_v24  ;;  %v1256_v51 = vmul.f32 %v4238_v40, %v1235_v45 }
 0x234   : > { %v3886_v48 = vpop.f32.mrf.mxu0  ;;  %3939 = vmatpush3.msra.mxu0 %v1461_v16  ;;  %3927 = vmatmul.mubr.msk.f32.gmra.mxu1 %vm298_vm0, %v4727_v38  ;;  %v1261_v55 = vsel %vm1259_vm2, %v1257_v46, 0.0 }
 0x235   : > { %v1663_v49 = vpop.f32.mrf.mxu1  ;;  %v4240_v50 = vpop.eup %4239  ;;  %3950 = vmatpush3.msra.mxu1 %v3886_v48  ;;  %3941 = vmatmul.mubr.msk.f32.vlgmr.msra.gmra.mxu0 %vm298_vm0, %v4719_v33  ;;  %v1260_v57 = vsel %vm1259_vm2, %v1256_v51, 0.0 }
 0x236   : > { %v1572_v52 = vpop.f32.mrf.mxu0  ;;  %3951 = vmatprep.subr.mxu1 %v4418_v24  ;;  %3966 = vmatprep.subr.mxu0 %v4418_v24  ;;  %v1258_v54 = vmul.f32 %v4240_v50, %v1237_v47  ;;  %v1262_v59 = vadd.f32 %v1261_v55, %v1260_v57 }
 0x237   : > { %v3900_v53 = vpop.f32.mrf.mxu1  ;;  %3952 = vmatpush3.msra.mxu1 %v1572_v52  ;;  %3929 = vmatprep.mubr.msk.f32.mxu1 %vm4419_vm1, %v4418_v24 }
 0x238   : > { %3967 = vmatpush3.msra.mxu0 %v3900_v53  ;;  %3953 = vmatprep.subr.mxu1 %v4418_v24  ;;  %v1264_v58 = vsel %vm1263_vm3, %v1258_v54, 0.0 }
 0x239   : > { %v1673_v56 = vpop.f32.mrf.mxu1  ;;  %3968 = vmatprep.subr.mxu0 %v4418_v24  ;;  %3943 = vmatprep.mubr.msk.f32.mxu0 %vm4419_vm1, %v4418_v24  ;;  %v1265_v61 = vadd.f32 %v1264_v58, %v1262_v59 }
 0x23a   : > { %3954 = vmatpush3.msra.mxu1 %v3883_v35  ;;  %3969 = vmatpush3.msra.mxu0 %v1673_v56 }
 0x23b   : > { %3930 = vmatmul.mubr.msk.f32.gmra.mxu1 %vm298_vm0, %v4737_v41  ;;  %3944 = vmatmul.mubr.msk.f32.gmra.mxu0 %vm298_vm0, %v4727_v38 }
 0x23c   : > { %3955 = vmatprep.subr.mxu1 %v4418_v24  ;;  %3970 = vmatprep.subr.mxu0 %v4418_v24  ;;  %v3911_v60 = vpop.f32.mrf.mxu0 }
 0x23d   : > { %3956 = vmatpush3.msra.mxu1 %v1562_v43  ;;  %3971 = vmatpush3.msra.mxu0 %v3897_v44 }
 0x23e   : > { %3972 = vmatprep.subr.mxu0 %v4418_v24  ;;  %3946 = vmatprep.mubr.msk.f32.mxu0 %vm4419_vm1, %v4418_v24  ;;  %v1764_v62 = vpop.f32.mrf.mxu0 }
 0x23f   : > { %3957 = vmatprep.mubr.msk.f32.mxu1 %vm4419_vm1, %v4418_v24  ;;  %3973 = vmatpush3.msra.mxu0 %v1663_v49 }
 0x240   : > { %3958 = vmatmul.mubr.msk.f32.vlgmr.msra.gmra.mxu1 %vm298_vm0, %v4719_v33  ;;  %1266 = vadd.xlane.f32.xlu0 %v1265_v61  ;;  %v3914_v63 = vpop.f32.mrf.mxu0 }
 0x241   : > { %3947 = vmatmul.mubr.msk.f32.gmra.mxu0 %vm298_vm0, %v4737_v41  ;;  %3983 = vmatprep.subr.mxu1 %v4418_v24 }
 0x242   : > { %3960 = vmatprep.mubr.msk.f32.mxu1 %vm4419_vm1, %v4418_v24  ;;  %3974 = vmatprep.mubr.msk.f32.mxu0 %vm4419_vm1, %v4418_v24  ;;  %v1774_v2 = vpop.f32.mrf.mxu0 }
 0x243   : > { %3984 = vmatpush3.msra.mxu1 %v3914_v63  ;;  %4000 = vmatprep.subr.mxu0 %v4635_v0 }
 0x244   : > { %3961 = vmatmul.mubr.msk.f32.gmra.mxu1 %vm298_vm0, %v4727_v38  ;;  %3985 = vmatprep.subr.mxu1 %v4418_v24 }
 0x245   : > { %3975 = vmatmul.mubr.msk.f32.vlgmr.msra.gmra.mxu0 %vm298_vm0, %v4719_v33  ;;  %3986 = vmatpush3.msra.mxu1 %v1774_v2 }
 0x246   : > { %4001 = vmatpush3.msra.mxu0 %v4635_v0  ;;  %3987 = vmatprep.subr.mxu1 %v4418_v24 }
 0x247   : > { %3963 = vmatprep.mubr.msk.f32.mxu1 %vm4419_vm1, %v4418_v24  ;;  %3977 = vmatprep.mubr.msk.f32.mxu0 %vm4419_vm1, %v4418_v24 }
 0x248   : > { %3988 = vmatpush3.msra.mxu1 %v3911_v60  ;;  %4002 = vmatprep.subr.mxu0 %v4637_v1 }
 0x249   : > { %3964 = vmatmul.mubr.msk.f32.gmra.mxu1 %vm298_vm0, %v4737_v41  ;;  %3978 = vmatmul.mubr.msk.f32.gmra.mxu0 %vm298_vm0, %v4727_v38 }
 0x24a   : > { %3989 = vmatprep.subr.mxu1 %v4418_v24  ;;  %4003 = vmatpush3.msra.mxu0 %v4637_v1 }
 0x24b   : > { %3990 = vmatpush3.msra.mxu1 %v1764_v62  ;;  %4004 = vmatprep.subr.mxu0 %v4643_v3 }
 0x24c   : > { %3980 = vmatprep.mubr.msk.f32.mxu0 %vm4419_vm1, %v4418_v24  ;;  %3991 = vmatprep.mubr.msk.f32.mxu1 %vm4419_vm1, %v4418_v24 }
 0x24d   : > { %4005 = vmatpush3.msra.mxu0 %v4643_v3  ;;  %3992 = vmatmul.mubr.msk.f32.vlgmr.msra.gmra.mxu1 %vm298_vm0, %v4719_v33  ;;  %v3422_v33 = vld [vmem:[%s4614_s25 + $0x50] sm:$0xff] }
 0x24e   : > { %3981 = vmatmul.mubr.msk.f32.gmra.mxu0 %vm298_vm0, %v4737_v41  ;;  %4006 = vmatprep.subr.mxu0 %v4649_v4 }
 0x24f   : > { %4007 = vmatpush3.msra.mxu0 %v4649_v4  ;;  %3994 = vmatprep.mubr.msk.f32.mxu1 %vm4419_vm1, %v4418_v24 }
 0x250   : > { %4008 = vmatprep.mubr.msk.f32.mxu0 %vm298_vm0, %v3420_v5  ;;  %4014 = vmatprep.subr.mxu0 %v4635_v0 }
 0x251   : > { %3995 = vmatmul.mubr.msk.f32.gmra.mxu1 %vm298_vm0, %v4727_v38  ;;  %4028 = vmatprep.subr.mxu1 %v4635_v0  ;;  %v2456_v38 = vmul.f32 %v3420_v5, %v3420_v5 }
 0x252   : > { %4009 = vmatmul.mubr.msk.f32.vlgmr.msra.gmra.mxu0 %vm298_vm0, %v3421_v6  ;;  %4029 = vmatpush3.msra.mxu1 %v4635_v0 }
 0x253   : > { %4015 = vmatpush3.msra.mxu0 %v4635_v0  ;;  %4030 = vmatprep.subr.mxu1 %v4637_v1 }
 0x254   : > { %4016 = vmatprep.subr.mxu0 %v4637_v1  ;;  %3997 = vmatprep.mubr.msk.f32.mxu1 %vm4419_vm1, %v4418_v24 }
 0x255   : > { %4011 = vmatprep.mubr.msk.f32.mxu0 %vm298_vm0, %v3422_v33  ;;  %4017 = vmatpush3.msra.mxu0 %v4637_v1 }
 0x256   : > { %4031 = vmatpush3.msra.mxu1 %v4637_v1  ;;  %4012 = vmatmul.mubr.msk.f32.gmra.mxu0 %vm298_vm0, %v3423_v7 }
 0x257   : > { %3998 = vmatmul.mubr.msk.f32.gmra.mxu1 %vm298_vm0, %v4737_v41  ;;  %4018 = vmatprep.subr.mxu0 %v4643_v3  ;;  %v2458_v41 = vmul.f32 %v3422_v33, %v3422_v33 }
 0x258   : > { %4032 = vmatprep.subr.mxu1 %v4643_v3  ;;  %4019 = vmatpush3.msra.mxu0 %v4643_v3 }
 0x259   : > { %4033 = vmatpush3.msra.mxu1 %v4643_v3  ;;  %4020 = vmatprep.subr.mxu0 %v4649_v4 }
 0x25a   : > { %4034 = vmatprep.subr.mxu1 %v4649_v4  ;;  %4021 = vmatpush3.msra.mxu0 %v4649_v4 }
 0x25b   : > { %4022 = vmatprep.mubr.msk.f32.mxu0 %vm298_vm0, %v3424_v9  ;;  %4035 = vmatpush3.msra.mxu1 %v4649_v4 }
 0x25c   : > { %4036 = vmatprep.mubr.msk.f32.mxu1 %vm298_vm0, %v2456_v38  ;;  %4023 = vmatmul.mubr.msk.f32.vlgmr.msra.gmra.mxu0 %vm298_vm0, %v3425_v14 }
 0x25d   : > { %4037 = vmatmul.mubr.msk.f32.vlgmr.msra.gmra.mxu1 %vm298_vm0, %v2457_v11  ;;  %4042 = vmatprep.subr.mxu0 %v4635_v0 }
 0x25e   : > { %4043 = vmatpush3.msra.mxu0 %v4635_v0  ;;  %4025 = vmatprep.mubr.msk.f32.mxu0 %vm298_vm0, %v3426_v15 }
 0x25f   : > { %4044 = vmatprep.subr.mxu0 %v4637_v1  ;;  %4039 = vmatprep.mubr.msk.f32.mxu1 %vm298_vm0, %v2458_v41 }
 0x260   : > { %4045 = vmatpush3.msra.mxu0 %v4637_v1  ;;  %4056 = vmatprep.subr.mxu1 %v4635_v0 }
 0x261   : > { %4026 = vmatmul.mubr.msk.f32.gmra.mxu0 %vm298_vm0, %v3427_v18  ;;  %4040 = vmatmul.mubr.msk.f32.gmra.mxu1 %vm298_vm0, %v2459_v17 }
 0x262   : > { %4046 = vmatprep.subr.mxu0 %v4643_v3  ;;  %4057 = vmatpush3.msra.mxu1 %v4635_v0  ;;  %v2660_v0 = vmul.f32 %v3426_v15, %v3422_v33 }
 0x263   : > { %4047 = vmatpush3.msra.mxu0 %v4643_v3  ;;  %4058 = vmatprep.subr.mxu1 %v4637_v1 }
 0x264   : > { %4048 = vmatprep.subr.mxu0 %v4649_v4  ;;  %4050 = vmatprep.mubr.msk.f32.mxu0 %vm298_vm0, %v2557_v19 }
 0x265   : > { %4049 = vmatpush3.msra.mxu0 %v4649_v4  ;;  %4059 = vmatpush3.msra.mxu1 %v4637_v1  ;;  %v2661_v1 = vmul.f32 %v3427_v18, %v3423_v7 }
 0x266   : > { %4051 = vmatmul.mubr.msk.f32.vlgmr.msra.gmra.mxu0 %vm298_vm0, %v2558_v21  ;;  %4060 = vmatprep.subr.mxu1 %v4643_v3 }
 0x267   : > { %4061 = vmatpush3.msra.mxu1 %v4643_v3  ;;  %4053 = vmatprep.mubr.msk.f32.mxu0 %vm298_vm0, %v2559_v22 }
 0x268   : > { %4062 = vmatprep.subr.mxu1 %v4649_v4  ;;  %4064 = vmatprep.mubr.msk.f32.mxu1 %vm298_vm0, %v2658_v23 }
 0x269   : > { %4063 = vmatpush3.msra.mxu1 %v4649_v4  ;;  %4070 = vmatprep.subr.mxu0 %v4418_v24 }
 0x26a   : > { %4054 = vmatmul.mubr.msk.f32.gmra.mxu0 %vm298_vm0, %v2560_v26  ;;  %4065 = vmatmul.mubr.msk.f32.vlgmr.msra.gmra.mxu1 %vm298_vm0, %v2659_v25 }
 0x26b   : > { %4067 = vmatprep.mubr.msk.f32.mxu1 %vm298_vm0, %v2660_v0  ;;  %4078 = vmatprep.mubr.msk.f32.mxu0 %vm4419_vm1, %v4418_v24 }
 0x26c   : > { %4087 = vmatprep.subr.mxu1 %v4418_v24 }
 0x26e   : > { %4068 = vmatmul.mubr.msk.f32.gmra.mxu1 %vm298_vm0, %v2661_v1 }
 0x26f   : > { %4095 = vmatprep.mubr.msk.f32.mxu1 %vm4419_vm1, %v4418_v24 }
 0x2c9   : > { %v1267_v3 = vpop.xlane.xlu0 %1266 }
 0x2ca   : > { %v1268_v4 = vrot.slane %v1267_v3, 4 }
 0x2cc   : > { %v1269_v10 = vadd.f32 %v1268_v4, %v1267_v3 }
 0x2ce   : > { %v1270_v16 = vrot.slane %v1269_v10, 2 }
 0x2d0   : > { %v1271_v27 = vadd.f32 %v1270_v16, %v1269_v10 }
 0x2d2   : > { %v1272_v28 = vrot.slane %v1271_v27, 1 }
 0x2d4   : > { %v1273_v8 = vadd.f32 %v1272_v28, %v1271_v27 }
 0x2d6   : > { %4160 = vpush %v1273_v8 }
 0x2f0   : > { %v1849_v12 = vpop.f32.mrf.mxu1 }
 0x2f1   : > { %v2183_v42 = vmul.f32 %v1849_v12, %v1849_v12 }
 0x2f2   : > { %v3925_v13 = vpop.f32.mrf.mxu1 }
 0x2f4   : > { %v1854_v20 = vpop.f32.mrf.mxu1 }
 0x2f5   : > { %v1929_v29 = vpop.f32.mrf.mxu0  ;;  %v2184_v47 = vmul.f32 %v1854_v20, %v1854_v20 }
 0x2f6   : > { %v3928_v30 = vpop.f32.mrf.mxu1  ;;  %v2186_v43 = vmul.f32 %v1929_v29, %v1929_v29  ;;  %v2189_v25 = vmul.f32 %v1929_v29, %v1849_v12 }
 0x2f7   : > { %v3942_v31 = vpop.f32.mrf.mxu0 }
 0x2f8   : > { %v2216_v52 = vadd.f32 %v2186_v43, %v2183_v42  ;;  %v2201_v29 = vmul.f32 2.0, %v2189_v25 }
 0x2fa   : > { %v2219_v61 = vadd.f32 6.5025, %v2216_v52 }
 0x2fb   : > { %v1859_v32 = vpop.f32.mrf.mxu1  ;;  %v1934_v34 = vpop.f32.mrf.mxu0 }
 0x2fc   : > { %v2187_v48 = vmul.f32 %v1934_v34, %v1934_v34  ;;  %v2185_v62 = vmul.f32 %v1859_v32, %v1859_v32  ;;  %v2190_v18 = vmul.f32 %v1934_v34, %v1854_v20 }
 0x2fd   : > { %v3931_v35 = vpop.f32.mrf.mxu1  ;;  %v3945_v36 = vpop.f32.mrf.mxu0 }
 0x2fe   : > { %v2217_v57 = vadd.f32 %v2187_v48, %v2184_v47  ;;  %v2202_v30 = vmul.f32 2.0, %v2190_v18 }
 0x300   : > { %v2009_v37 = vpop.f32.mrf.mxu1  ;;  %v2220_v38 = vadd.f32 6.5025, %v2217_v57 }
 0x301   : > { %v1939_v39 = vpop.f32.mrf.mxu0  ;;  %v2192_v49 = vsub.f32 %v2009_v37, %v2183_v42 }
 0x302   : > { %v3959_v40 = vpop.f32.mrf.mxu1  ;;  %v2188_v63 = vmul.f32 %v1939_v39, %v1939_v39  ;;  %v2191_v28 = vmul.f32 %v1939_v39, %v1859_v32  ;;  %v2205_v32 = vadd.f32 6.5025, %v2202_v30 }
 0x303   : > { %v3948_v44 = vpop.f32.mrf.mxu0 }
 0x304   : > { %v2014_v45 = vpop.f32.mrf.mxu1  ;;  %v2218_v14 = vadd.f32 %v2188_v63, %v2185_v62  ;;  %v2203_v42 = vmul.f32 2.0, %v2191_v28 }
 0x305   : > { %v2089_v46 = vpop.f32.mrf.mxu0  ;;  %v2193_v58 = vsub.f32 %v2014_v45, %v2184_v47  ;;  %v2204_v45 = vadd.f32 6.5025, %v2201_v29 }
 0x306   : > { %v2195_v50 = vsub.f32 %v2089_v46, %v2186_v43  ;;  %v3962_v51 = vpop.f32.mrf.mxu1  ;;  %v2221_v1 = vadd.f32 6.5025, %v2218_v14 }
 0x307   : > { %v3976_v53 = vpop.f32.mrf.mxu0  ;;  %s4161_s20 = spop %4160 }
 0x308   : > { %v2222_v54 = vadd.f32 %v2195_v50, %v2192_v49 }
 0x309   : > { %v2019_v55 = vpop.f32.mrf.mxu1  ;;  %v2094_v56 = vpop.f32.mrf.mxu0 }
 0x30a   : > { %v2225_v59 = vadd.f32 58.5225, %v2222_v54  ;;  %v2196_v60 = vsub.f32 %v2094_v56, %v2187_v48  ;;  %v2194_v41 = vsub.f32 %v2019_v55, %v2185_v62  ;;  %v5025_v48 = vld [vmem:[#allocation7] sm:$0xff]  ;;  %v2206_v54 = vadd.f32 6.5025, %v2203_v42 }
 0x30b   : > { %v3965_v2 = vpop.f32.mrf.mxu1  ;;  %v3979_v5 = vpop.f32.mrf.mxu0 }
 0x30c   : > { %v2223_v6 = vadd.f32 %v2196_v60, %v2193_v58  ;;  %v2228_v33 = vmul.f32 %v2225_v59, %v2219_v61 }
 0x30d   : > { %v2169_v7 = vpop.f32.mrf.mxu1 }
 0x30e   : > { %v2226_v9 = vadd.f32 58.5225, %v2223_v6  ;;  %v2099_v11 = vpop.f32.mrf.mxu0  ;;  %4241 = vrcp.f32 %v2228_v33  ;;  %v2198_v10 = vsub.f32 %v2169_v7, %v2189_v25 }
 0x30f   : > { %v2197_v15 = vsub.f32 %v2099_v11, %v2188_v63  ;;  %v3993_v17 = vpop.f32.mrf.mxu1  ;;  %v5035_v63 = vld [vmem:[#allocation7 + $0x8] sm:$0xff] }
 0x310   : > { %v2229_v19 = vmul.f32 %v2226_v9, %v2220_v38  ;;  %v3982_v21 = vpop.f32.mrf.mxu0  ;;  %v2207_v31 = vmul.f32 2.0, %v2198_v10 }
 0x311   : > { %v2224_v22 = vadd.f32 %v2197_v15, %v2194_v41  ;;  %v2174_v23 = vpop.f32.mrf.mxu1  ;;  %v4255_v41 = vld [vmem:[#allocation7 + $0x10] sm:$0x3f] }
 0x312   : > { %4243 = vrcp.f32 %v2229_v19  ;;  %v2199_v26 = vsub.f32 %v2174_v23, %v2190_v18  ;;  %v4010_v0 = vpop.f32.mrf.mxu0  ;;  %v2210_v39 = vadd.f32 58.5225, %v2207_v31 }
 0x313   : > { %v2227_v3 = vadd.f32 58.5225, %v2224_v22  ;;  %v3996_v4 = vpop.f32.mrf.mxu1 }
 0x314   : > { %v2340_v16 = vpop.f32.mrf.mxu0  ;;  %v2208_v8 = vmul.f32 2.0, %v2199_v26  ;;  %v2213_v52 = vmul.f32 %v2210_v39, %v2204_v45 }
 0x315   : > { %v2230_v27 = vmul.f32 %v2227_v3, %v2221_v1 }
 0x316   : > { %v4013_v13 = vpop.f32.mrf.mxu0  ;;  %v2211_v36 = vadd.f32 58.5225, %v2208_v8 }
 0x317   : > { %4245 = vrcp.f32 %v2230_v27  ;;  %v2179_v20 = vpop.f32.mrf.mxu1  ;;  %4071 = vmatpush3.msra.mxu0 %v4013_v13 }
 0x318   : > { %v2200_v34 = vsub.f32 %v2179_v20, %v2191_v28  ;;  %v2350_v35 = vpop.f32.mrf.mxu0  ;;  %4072 = vmatprep.subr.mxu0 %v4418_v24  ;;  %v2214_v46 = vmul.f32 %v2211_v36, %v2205_v32 }
 0x319   : > { %v3999_v12 = vpop.f32.mrf.mxu1  ;;  %4073 = vmatpush3.msra.mxu0 %v2350_v35 }
 0x31a   : > { %4074 = vmatprep.subr.mxu0 %v4418_v24  ;;  %v2209_v37 = vmul.f32 2.0, %v2200_v34 }
 0x31b   : > { %4075 = vmatpush3.msra.mxu0 %v4010_v0  ;;  %v4242_v44 = vpop.eup %4241 }
 0x31c   : > { %v4024_v40 = vpop.f32.mrf.mxu0  ;;  %4076 = vmatprep.subr.mxu0 %v4418_v24  ;;  %v2212_v50 = vadd.f32 58.5225, %v2209_v37  ;;  %v2234_v57 = vmul.f32 %v4242_v44, %v2213_v52 }
 0x31d   : > { %v4038_v43 = vpop.f32.mrf.mxu1  ;;  %4077 = vmatpush3.msra.mxu0 %v2340_v16 }
 0x31e   : > { %v2437_v47 = vpop.f32.mrf.mxu0  ;;  %4079 = vmatmul.mubr.msk.f32.vlgmr.msra.gmra.mxu0 %vm298_vm0, %v5025_v48  ;;  %4104 = vmatprep.subr.mxu0 %v4418_v24  ;;  %v2215_v58 = vmul.f32 %v2212_v50, %v2206_v54  ;;  %v2237_v6 = vsel %vm1259_vm2, %v2234_v57, 0.0 }
 0x31f   : > { %v4244_v49 = vpop.eup %4243  ;;  %v2538_v51 = vpop.f32.mrf.mxu1  ;;  %4081 = vmatprep.mubr.msk.f32.mxu0 %vm4419_vm1, %v4418_v24 }
 0x320   : > { %v2235_v53 = vmul.f32 %v4244_v49, %v2214_v46 }
 0x321   : > { %v4027_v55 = vpop.f32.mrf.mxu0  ;;  %v4041_v56 = vpop.f32.mrf.mxu1 }
 0x322   : > { %4088 = vmatpush3.msra.mxu1 %v4027_v55  ;;  %4105 = vmatpush3.msra.mxu0 %v4041_v56  ;;  %v2238_v62 = vsel %vm1259_vm2, %v2235_v53, 0.0 }
 0x323   : > { %v2447_v59 = vpop.f32.mrf.mxu0  ;;  %v2548_v60 = vpop.f32.mrf.mxu1  ;;  %4089 = vmatprep.subr.mxu1 %v4418_v24  ;;  %4106 = vmatprep.subr.mxu0 %v4418_v24  ;;  %v2239_v33 = vadd.f32 %v2238_v62, %v2237_v6 }
 0x324   : > { %v4246_v61 = vpop.eup %4245  ;;  %4090 = vmatpush3.msra.mxu1 %v2447_v59  ;;  %4107 = vmatpush3.msra.mxu0 %v2548_v60 }
 0x325   : > { %4082 = vmatmul.mubr.msk.f32.gmra.mxu0 %vm298_vm0, %v5035_v63  ;;  %4091 = vmatprep.subr.mxu1 %v4418_v24  ;;  %v2236_v2 = vmul.f32 %v4246_v61, %v2215_v58 }
 0x326   : > { %v4052_v5 = vpop.f32.mrf.mxu0  ;;  %4108 = vmatprep.subr.mxu0 %v4418_v24  ;;  %4092 = vmatpush3.msra.mxu1 %v4024_v40 }
 0x327   : > { %4109 = vmatpush3.msra.mxu0 %v4038_v43  ;;  %4093 = vmatprep.subr.mxu1 %v4418_v24  ;;  %v2240_v7 = vsel %vm1263_vm3, %v2236_v2, 0.0 }
 0x328   : > { %v2639_v38 = vpop.f32.mrf.mxu0  ;;  %4110 = vmatprep.subr.mxu0 %v4418_v24  ;;  %4084 = vmatprep.mubr.msk.f32.mxu0 %vm4419_vm1, %v4418_v24  ;;  %v2241_v9 = vadd.f32 %v2240_v7, %v2239_v33 }
 0x329   : > { %4094 = vmatpush3.msra.mxu1 %v2437_v47  ;;  %4111 = vmatpush3.msra.mxu0 %v2538_v51 }
 0x32a   : > { %v4055_v11 = vpop.f32.mrf.mxu0  ;;  %v4066_v14 = vpop.f32.mrf.mxu1  ;;  %4085 = vmatmul.mubr.msk.f32.gmra.mxu0 %vm298_vm0, %v4255_v41  ;;  %4096 = vmatmul.mubr.msk.f32.vlgmr.msra.gmra.mxu1 %vm298_vm0, %v5025_v48 }
 0x32b   : > { %4121 = vmatprep.subr.mxu1 %v4418_v24  ;;  %4098 = vmatprep.mubr.msk.f32.mxu1 %vm4419_vm1, %v4418_v24 }
 0x32c   : > { %4122 = vmatpush3.msra.mxu1 %v4055_v11  ;;  %v2649_v15 = vpop.f32.mrf.mxu0  ;;  %v2740_v17 = vpop.f32.mrf.mxu1  ;;  %4112 = vmatprep.mubr.msk.f32.mxu0 %vm4419_vm1, %v4418_v24 }
 0x32d   : > { %4123 = vmatprep.subr.mxu1 %v4418_v24  ;;  %2242 = vadd.xlane.f32.xlu0 %v2241_v9 }
 0x32e   : > { %4124 = vmatpush3.msra.mxu1 %v2649_v15  ;;  %v4069_v18 = vpop.f32.mrf.mxu1  ;;  %4113 = vmatmul.mubr.msk.f32.vlgmr.msra.gmra.mxu0 %vm298_vm0, %v5025_v48 }
 0x32f   : > { %4099 = vmatmul.mubr.msk.f32.gmra.mxu1 %vm298_vm0, %v5035_v63  ;;  %4125 = vmatprep.subr.mxu1 %v4418_v24 }
 0x330   : > { %4138 = vmatprep.subr.mxu0 %v4418_v24  ;;  %4126 = vmatpush3.msra.mxu1 %v4052_v5  ;;  %v2750_v19 = vpop.f32.mrf.mxu1 }
 0x331   : > { %4139 = vmatpush3.msra.mxu0 %v4069_v18  ;;  %4127 = vmatprep.subr.mxu1 %v4418_v24 }
 0x332   : > { %4140 = vmatprep.subr.mxu0 %v4418_v24  ;;  %4101 = vmatprep.mubr.msk.f32.mxu1 %vm4419_vm1, %v4418_v24 }
 0x333   : > { %4115 = vmatprep.mubr.msk.f32.mxu0 %vm4419_vm1, %v4418_v24  ;;  %4128 = vmatpush3.msra.mxu1 %v2639_v38 }
 0x334   : > { %4141 = vmatpush3.msra.mxu0 %v2750_v19  ;;  %4102 = vmatmul.mubr.msk.f32.gmra.mxu1 %vm298_vm0, %v4255_v41 }
 0x335   : > { %4116 = vmatmul.mubr.msk.f32.gmra.mxu0 %vm298_vm0, %v5035_v63  ;;  %4142 = vmatprep.subr.mxu0 %v4418_v24 }
 0x336   : > { %4143 = vmatpush3.msra.mxu0 %v4066_v14  ;;  %4118 = vmatprep.mubr.msk.f32.mxu0 %vm4419_vm1, %v4418_v24 }
 0x337   : > { %4144 = vmatprep.subr.mxu0 %v4418_v24  ;;  %4129 = vmatprep.mubr.msk.f32.mxu1 %vm4419_vm1, %v4418_v24 }
 0x338   : > { %4145 = vmatpush3.msra.mxu0 %v2740_v17  ;;  %4130 = vmatmul.mubr.msk.f32.vlgmr.msra.gmra.mxu1 %vm298_vm0, %v5025_v48 }
 0x339   : > { %4119 = vmatmul.mubr.msk.f32.gmra.mxu0 %vm298_vm0, %v4255_v41  ;;  %4132 = vmatprep.mubr.msk.f32.mxu1 %vm4419_vm1, %v4418_v24 }
 0x33a   : > { %4146 = vmatprep.mubr.msk.f32.mxu0 %vm4419_vm1, %v4418_v24 }
 0x33c   : > { %4133 = vmatmul.mubr.msk.f32.gmra.mxu1 %vm298_vm0, %v5035_v63 }
 0x33d   : > { %4147 = vmatmul.mubr.msk.f32.vlgmr.msra.gmra.mxu0 %vm298_vm0, %v5025_v48  ;;  %4135 = vmatprep.mubr.msk.f32.mxu1 %vm4419_vm1, %v4418_v24 }
 0x33e   : > { %4149 = vmatprep.mubr.msk.f32.mxu0 %vm4419_vm1, %v4418_v24 }
 0x340   : > { %4136 = vmatmul.mubr.msk.f32.gmra.mxu1 %vm298_vm0, %v4255_v41 }
 0x341   : > { %4150 = vmatmul.mubr.msk.f32.gmra.mxu0 %vm298_vm0, %v5035_v63 }
 0x342   : > { %4152 = vmatprep.mubr.msk.f32.mxu0 %vm4419_vm1, %v4418_v24 }
 0x345   : > { %4153 = vmatmul.mubr.msk.f32.gmra.mxu0 %vm298_vm0, %v4255_v41 }
 0x3b6   : > { %v2243_v21 = vpop.xlane.xlu0 %2242 }
 0x3b7   : > { %v2244_v22 = vrot.slane %v2243_v21, 4 }
 0x3b9   : > { %v2245_v23 = vadd.f32 %v2244_v22, %v2243_v21 }
 0x3bb   : > { %v2246_v25 = vrot.slane %v2245_v23, 2 }
 0x3bd   : > { %v2247_v26 = vadd.f32 %v2246_v25, %v2245_v23 }
 0x3bf   : > { %v2248_v0 = vrot.slane %v2247_v26, 1 }
 0x3c1   : > { %v2249_v1 = vadd.f32 %v2248_v0, %v2247_v26 }
 0x3c3   : > { %4162 = vpush %v2249_v1 }
 0x3de   : > { %v2825_v3 = vpop.f32.mrf.mxu0 }
 0x3df   : > { %v3159_v34 = vmul.f32 %v2825_v3, %v2825_v3 }
 0x3e0   : > { %v4080_v4 = vpop.f32.mrf.mxu0 }
 0x3e5   : > { %v2830_v10 = vpop.f32.mrf.mxu0 }
 0x3e6   : > { %v3160_v40 = vmul.f32 %v2830_v10, %v2830_v10 }
 0x3e7   : > { %v4083_v16 = vpop.f32.mrf.mxu0 }
 0x3ea   : > { %v2835_v27 = vpop.f32.mrf.mxu0  ;;  %v2905_v28 = vpop.f32.mrf.mxu1 }
 0x3eb   : > { %v3162_v35 = vmul.f32 %v2905_v28, %v2905_v28  ;;  %v3161_v49 = vmul.f32 %v2835_v27, %v2835_v27  ;;  %v3165_v38 = vmul.f32 %v2905_v28, %v2825_v3 }
 0x3ec   : > { %v4086_v8 = vpop.f32.mrf.mxu0  ;;  %v4097_v13 = vpop.f32.mrf.mxu1 }
 0x3ed   : > { %v3192_v32 = vadd.f32 %v3162_v35, %v3159_v34  ;;  %v3177_v3 = vmul.f32 2.0, %v3165_v38 }
 0x3ee   : > { %v2985_v20 = vpop.f32.mrf.mxu0 }
 0x3ef   : > { %v2910_v24 = vpop.f32.mrf.mxu1  ;;  %v3168_v43 = vsub.f32 %v2985_v20, %v3159_v34  ;;  %v3195_v50 = vadd.f32 6.5025, %v3192_v32  ;;  %v3180_v13 = vadd.f32 6.5025, %v3177_v3 }
 0x3f0   : > { %v4114_v30 = vpop.f32.mrf.mxu0  ;;  %v3163_v42 = vmul.f32 %v2910_v24, %v2910_v24  ;;  %v3166_v11 = vmul.f32 %v2910_v24, %v2830_v10 }
 0x3f1   : > { %v4100_v31 = vpop.f32.mrf.mxu1 }
 0x3f2   : > { %v3193_v53 = vadd.f32 %v3163_v42, %v3160_v40  ;;  %v3178_v16 = vmul.f32 2.0, %v3166_v11 }
 0x3f4   : > { %v2915_v12 = vpop.f32.mrf.mxu1  ;;  %v3196_v2 = vadd.f32 6.5025, %v3193_v53  ;;  %v3181_v20 = vadd.f32 6.5025, %v3178_v16  ;;  %s4163_s21 = spop %4162 }
 0x3f5   : > { %v2990_v29 = vpop.f32.mrf.mxu0  ;;  %v3164_v51 = vmul.f32 %v2915_v12, %v2915_v12  ;;  %v3167_v23 = vmul.f32 %v2915_v12, %v2835_v27  ;;  %s2251_s29 = sadd.f32 %s4163_s21, %s4161_s20 }
 0x3f6   : > { %v4103_v36 = vpop.f32.mrf.mxu1  ;;  %v3169_v54 = vsub.f32 %v2990_v29, %v3160_v40 }
 0x3f7   : > { %v4117_v37 = vpop.f32.mrf.mxu0  ;;  %v3194_v62 = vadd.f32 %v3164_v51, %v3161_v49  ;;  %v3179_v24 = vmul.f32 2.0, %v3167_v23 }
 0x3f8   : > { %v3065_v39 = vpop.f32.mrf.mxu1 }
 0x3f9   : > { %v2995_v44 = vpop.f32.mrf.mxu0  ;;  %v3171_v45 = vsub.f32 %v3065_v39, %v3162_v35  ;;  %v3197_v17 = vadd.f32 6.5025, %v3194_v62  ;;  %v3182_v27 = vadd.f32 6.5025, %v3179_v24 }
 0x3fa   : > { %v4131_v46 = vpop.f32.mrf.mxu1  ;;  %v3170_v5 = vsub.f32 %v2995_v44, %v3161_v49 }
 0x3fb   : > { %v3198_v47 = vadd.f32 %v3171_v45, %v3168_v43  ;;  %v4120_v48 = vpop.f32.mrf.mxu0 }
 0x3fc   : > { %v3070_v52 = vpop.f32.mrf.mxu1 }
 0x3fd   : > { %v3201_v55 = vadd.f32 58.5225, %v3198_v47  ;;  %v3172_v56 = vsub.f32 %v3070_v52, %v3163_v42  ;;  %v3145_v57 = vpop.f32.mrf.mxu0 }
 0x3fe   : > { %v4134_v58 = vpop.f32.mrf.mxu1  ;;  %v3174_v18 = vsub.f32 %v3145_v57, %v3165_v38 }
 0x3ff   : > { %v3204_v59 = vmul.f32 %v3201_v55, %v3195_v50  ;;  %v3199_v60 = vadd.f32 %v3172_v56, %v3169_v54  ;;  %v4148_v61 = vpop.f32.mrf.mxu0 }
 0x400   : > { %v3075_v63 = vpop.f32.mrf.mxu1  ;;  %v3183_v0 = vmul.f32 2.0, %v3174_v18 }
 0x401   : > { %v3202_v6 = vadd.f32 58.5225, %v3199_v60  ;;  %v3173_v33 = vsub.f32 %v3075_v63, %v3164_v51  ;;  %v3150_v7 = vpop.f32.mrf.mxu0  ;;  %4247 = vrcp.f32 %v3204_v59 }
 0x402   : > { %v4137_v9 = vpop.f32.mrf.mxu1  ;;  %v3175_v21 = vsub.f32 %v3150_v7, %v3166_v11  ;;  %v3186_v10 = vadd.f32 58.5225, %v3183_v0 }
 0x403   : > { %v3205_v14 = vmul.f32 %v3202_v6, %v3196_v2  ;;  %v3200_v41 = vadd.f32 %v3173_v33, %v3170_v5  ;;  %v4151_v15 = vpop.f32.mrf.mxu0 }
 0x404   : > { %v3184_v1 = vmul.f32 2.0, %v3175_v21  ;;  %v3189_v31 = vmul.f32 %v3186_v10, %v3180_v13 }
 0x405   : > { %4249 = vrcp.f32 %v3205_v14  ;;  %v3203_v19 = vadd.f32 58.5225, %v3200_v41  ;;  %v3155_v22 = vpop.f32.mrf.mxu0 }
 0x406   : > { %v3176_v4 = vsub.f32 %v3155_v22, %v3167_v23  ;;  %v3187_v28 = vadd.f32 58.5225, %v3184_v1 }
 0x407   : > { %v3206_v25 = vmul.f32 %v3203_v19, %v3197_v17  ;;  %v4154_v26 = vpop.f32.mrf.mxu0 }
 0x408   : > { %v3185_v8 = vmul.f32 2.0, %v3176_v4  ;;  %v3190_v34 = vmul.f32 %v3187_v28, %v3181_v20 }
 0x409   : > { %4251 = vrcp.f32 %v3206_v25 }
 0x40a   : > { %v3188_v35 = vadd.f32 58.5225, %v3185_v8 }
 0x40c   : > { %v3191_v37 = vmul.f32 %v3188_v35, %v3182_v27 }
 0x40e   : > { %v4248_v30 = vpop.eup %4247 }
 0x40f   : > { %v3210_v12 = vmul.f32 %v4248_v30, %v3189_v31 }
 0x411   : > { %v3213_v42 = vsel %vm1259_vm2, %v3210_v12, 0.0 }
 0x412   : > { %v4250_v29 = vpop.eup %4249 }
 0x413   : > { %v3211_v36 = vmul.f32 %v4250_v29, %v3190_v34 }
 0x415   : > { %v3214_v32 = vsel %vm1259_vm2, %v3211_v36, 0.0 }
 0x416   : > { %v4252_v39 = vpop.eup %4251  ;;  %v3215_v43 = vadd.f32 %v3214_v32, %v3213_v42 }
 0x417   : > { %v3212_v40 = vmul.f32 %v4252_v39, %v3191_v37 }
 0x419   : > { %v3216_v44 = vsel %vm1263_vm3, %v3212_v40, 0.0 }
 0x41a   : > { %v3217_v45 = vadd.f32 %v3216_v44, %v3215_v43 }
 0x41c   : > { %3218 = vadd.xlane.f32.xlu1 %v3217_v45 }
 0x4a5   : > { %v3219_v46 = vpop.xlane.xlu1 %3218 }
 0x4a6   : > { %v3220_v47 = vrot.slane %v3219_v46, 4 }
 0x4a8   : > { %v3221_v48 = vadd.f32 %v3220_v47, %v3219_v46 }
 0x4aa   : > { %v3222_v49 = vrot.slane %v3221_v48, 2 }
 0x4ac   : > { %v3223_v50 = vadd.f32 %v3222_v49, %v3221_v48 }
 0x4ae   : > { %v3224_v51 = vrot.slane %v3223_v50, 1 }
 0x4b0   : > { %v3225_v52 = vadd.f32 %v3224_v51, %v3223_v50 }
 0x4b2   : > { %4164 = vpush %v3225_v52 }
 0x4e3   : > { %s4165_s10 = spop %4164 }
 0x4e4   : > { %s3227_s24 = sadd.f32 %s4165_s10, %s2251_s29 }
 0x4e6   : > { %s3228_s5 = smul.f32 0.00068870524, %s3227_s24 }
 0x4e8   : > { %v3229_v53 = vstv %s3228_s5 }
 0x4e9   : > { %3230 = vst [vmem:[%s282_s22] sm:$0x1] %v3229_v53 }
 0x4ea PF: > { %p18_p3 = scmp.ge.s32.totalorder %s4513_s9, 4   ;;  %s5135_s15 = smov %s4402_s16 }
 0x4eb   : > { %s5136_s16 = smov %s4406_s17  ;;  %s5137_s17 = smov %s4524_s13 }
 0x4ec   : > { %s5138_s18 = smov %s4513_s9  ;;  %20 = sbr.rel (!%p18_p3) target bundleno = 6 (0x6), region = 101 }
 0x4f1   :  { %3248 = vsyncpa [#allocation3], 1 }
 0x4f2   :  { %3250 = vsyncpa [#allocation3 + $0x1], 1 }
 0x4f3   :  { %3251 = vsyncpa [#allocation5], 1 }
 0x4f4   :  { %3253 = vsyncpa [#allocation5 + $0x1], 1 }
 0x4f5   :  { %3254 = vsyncpa [#allocation8], 1 }

</bundles_post_ra>
